<compile_context>
chip_gen: v6e
topology: v6e:2x2x1
jax: 0.10.0
libtpu: 0.0.40
codegen_flags: <defaults>
</compile_context>

<pallas_src>
from functools import partial

import jax
import jax.numpy as jnp
import numpy as np
from jax import lax
from jax.experimental import pallas as pl
from jax.experimental.pallas import tpu as pltpu


def rnn_lstm_kernel(ids_ref, emb_ref,
                    wih0_ref, whh0_ref, b0_ref,
                    w1_ref, b1_ref,
                    wfc_ref, bfc_ref,
                    out_ref):
    """ids: (S,1) int32; emb: (V,E); wih0: (E,4H); whh0: (H,4H); b0: (1,4H);
    w1: (2H,4H) = [W_ih1; W_hh1] stacked; b1: (1,4H); wfc: (H,V); bfc: (1,V);
    out: (S,V).  All LSTM i/f/o gate columns are pre-scaled by 0.5 so that
    sigmoid(x) = 0.5*tanh(x/2) + 0.5 needs a single tanh per cell."""
    S, V = out_ref.shape
    H = whh0_ref.shape[0]

    # ---- embedding gather as a single one-hot MXU matmul (OOB-safe) --------
    ids = ids_ref[...]                                            # (S, 1) int32
    iota = lax.broadcasted_iota(jnp.int32, (S, V), 1)
    one_hot = (iota == ids).astype(jnp.float32)                   # (S, V)
    x = jnp.dot(one_hot, emb_ref[...],
                preferred_element_type=jnp.float32)               # (S, E)

    # ---- layer-0 input projection hoisted out of the recurrence ------------
    xp0 = jnp.dot(x, wih0_ref[...],
                  preferred_element_type=jnp.float32) + b0_ref[...]   # (S, 4H)

    whh0 = whh0_ref[...]          # loop-invariant RHS, stays resident in vregs
    w1 = w1_ref[...]              # (2H, 4H) stacked layer-1 weights
    b1 = b1_ref[...]

    # Hoisted constants for the sigmoid-via-tanh fixup (i/f/o lanes: 0.5*t+0.5,
    # g lanes: identity).  Built once; reused in every unrolled step.
    h_half = jnp.full((1, H), 0.5, jnp.float32)
    alpha = jnp.concatenate([h_half, h_half,
                             jnp.ones((1, H), jnp.float32), h_half], axis=1)
    beta = jnp.concatenate([h_half, h_half,
                            jnp.zeros((1, H), jnp.float32), h_half], axis=1)

    def cell(gates_pre, c):
        # gates_pre already has i/f/o pre-scaled by 0.5 (baked into weights).
        th = jnp.tanh(gates_pre)          # ONE EUP push per cell for the gates
        act = alpha * th + beta           # i,f,o -> sigmoid ; g -> tanh
        i_g = act[:, 0:H]
        f_g = act[:, H:2 * H]
        g_g = act[:, 2 * H:3 * H]
        o_g = act[:, 3 * H:4 * H]
        c_new = f_g * c + i_g * g_g
        h_new = o_g * jnp.tanh(c_new)
        return h_new, c_new

    zeros = jnp.zeros((1, H), jnp.float32)
    h0, c0 = zeros, zeros                 # layer-0 (bottom) state
    h1, c1 = zeros, zeros                 # layer-1 (top) state
    h0_hist = [None] * S
    hs2 = []

    # Skewed, statically unrolled interleave of the two layers: iteration t
    # evaluates layer-0 step t and layer-1 step t-1.  The two cell evaluations
    # inside one iteration are independent, so the scheduler overlaps their
    # MXU pushes, tanh pushes and VPU combines -> ~S+1 serialized cells total.
    for t in range(S + 1):
        if t < S:
            gates0 = xp0[t:t + 1, :] + jnp.dot(
                h0, whh0, preferred_element_type=jnp.float32)       # (1, 4H)
            h0_new, c0_new = cell(gates0, c0)
        if t >= 1:
            # One MXU op per layer-1 step on the stacked [input ; hidden] row.
            inp1 = jnp.concatenate([h0_hist[t - 1], h1], axis=1)    # (1, 2H)
            gates1 = jnp.dot(inp1, w1,
                             preferred_element_type=jnp.float32) + b1
            h1, c1 = cell(gates1, c1)
            hs2.append(h1)
        if t < S:
            h0, c0 = h0_new, c0_new
            h0_hist[t] = h0

    h2 = jnp.concatenate(hs2, axis=0)                               # (S, H)

    # ---- fc + ReLU + LogSoftmax(dim=1), lane-dense (S, V) store ------------
    logits = jnp.dot(h2, wfc_ref[...],
                     preferred_element_type=jnp.float32) + bfc_ref[...]
    logits = jnp.maximum(logits, 0.0)
    m = jnp.max(logits, axis=1, keepdims=True)
    lse = jnp.log(jnp.sum(jnp.exp(logits - m), axis=1, keepdims=True)) + m
    out_ref[...] = logits - lse


def make_params(key, vocab_len, embedding_dim, hidden_dim):
    keys = jax.random.split(key, 12)
    k = 1.0 / float(np.sqrt(hidden_dim))            # PyTorch nn.LSTM default init

    def u(kk, shape, bound):
        return jax.random.uniform(kk, shape, jnp.float32, -bound, bound)

    params = dict(
        emb=u(keys[0], (vocab_len, embedding_dim), 1.0),   # word_embedding: U(-1, 1)
        # LSTM layer 0
        w_ih0=u(keys[1], (4 * hidden_dim, embedding_dim), k),
        w_hh0=u(keys[2], (4 * hidden_dim, hidden_dim), k),
        b_ih0=u(keys[3], (4 * hidden_dim,), k),
        b_hh0=u(keys[4], (4 * hidden_dim,), k),
        # LSTM layer 1
        w_ih1=u(keys[5], (4 * hidden_dim, hidden_dim), k),
        w_hh1=u(keys[6], (4 * hidden_dim, hidden_dim), k),
        b_ih1=u(keys[7], (4 * hidden_dim,), k),
        b_hh1=u(keys[8], (4 * hidden_dim,), k),
    )
    # fc follows weights_init: U(-sqrt(6/(fan_in+fan_out)), +...), bias = 0
    wb = float(np.sqrt(6.0 / (hidden_dim + vocab_len)))
    params["w_fc"] = u(keys[9], (vocab_len, hidden_dim), wb)
    params["b_fc"] = jnp.zeros((vocab_len,), jnp.float32)
    return params


def prepare_kernel_params(params):
    """One-time preprocessing off the hot path:
      * pre-transpose all weights so the kernel only does row @ (in, 4H) dots,
      * pre-sum b_ih + b_hh,
      * pre-scale the i/f/o gate rows by 0.5 (sigmoid(x) = 0.5*tanh(x/2)+0.5),
      * stack layer-1's [W_ih1; W_hh1] into one (2H, 4H) matrix."""
    H = params["w_hh0"].shape[1]
    scale = np.ones((4 * H, 1), np.float32)
    scale[0:H] = 0.5            # i
    scale[H:2 * H] = 0.5        # f
    scale[3 * H:4 * H] = 0.5    # o  (g rows 2H:3H stay 1.0 -> exact tanh)
    scale = jnp.asarray(scale)

    wih1_t = (params["w_ih1"] * scale).T                   # (H, 4H)
    whh1_t = (params["w_hh1"] * scale).T                   # (H, 4H)
    return dict(
        emb=params["emb"].astype(jnp.float32),
        wih0=(params["w_ih0"] * scale).T,                  # (E, 4H)
        whh0=(params["w_hh0"] * scale).T,                  # (H, 4H)
        b0=((params["b_ih0"] + params["b_hh0"]) * scale[:, 0])[None, :],
        w1=jnp.concatenate([wih1_t, whh1_t], axis=0),      # (2H, 4H)
        b1=((params["b_ih1"] + params["b_hh1"]) * scale[:, 0])[None, :],
        wfc=params["w_fc"].T,                              # (H, V)
        bfc=params["b_fc"][None, :],
    )


@partial(jax.jit, static_argnames=("is_test",))
def rnn_model_forward(sentence, kparams, is_test=False):
    S = sentence.shape[0]
    V = kparams["wfc"].shape[1]

    vmem = pl.BlockSpec(memory_space=pltpu.MemorySpace.VMEM)
    out = pl.pallas_call(
        rnn_lstm_kernel,
        out_shape=jax.ShapeDtypeStruct((S, V), jnp.float32),
        in_specs=[vmem] * 9,
        out_specs=vmem,
    )(sentence.astype(jnp.int32).reshape(S, 1),
      kparams["emb"],
      kparams["wih0"], kparams["whh0"], kparams["b0"],
      kparams["w1"], kparams["b1"],
      kparams["wfc"], kparams["bfc"])

    if is_test:
        return out[-1:, :]     # prediction = out[-1, :].view(1, -1)
    return out


def reference_forward(sentence, params):
    """Pure-JAX reference matching PyTorch LSTM/Linear/LogSoftmax semantics."""
    emb = params["emb"][sentence.reshape(-1)].astype(jnp.float32)

    def lstm_layer(x, w_ih, w_hh, b_ih, b_hh):
        H = w_hh.shape[1]

        def step(carry, xt):
            h, c = carry
            gates = xt @ w_ih.T + b_ih + h @ w_hh.T + b_hh
            i = jax.nn.sigmoid(gates[0:H])
            f = jax.nn.sigmoid(gates[H:2 * H])
            g = jnp.tanh(gates[2 * H:3 * H])
            o = jax.nn.sigmoid(gates[3 * H:4 * H])
            c = f * c + i * g
            h = o * jnp.tanh(c)
            return (h, c), h

        init = (jnp.zeros((H,), jnp.float32), jnp.zeros((H,), jnp.float32))
        _, hs = lax.scan(step, init, x)
        return hs

    h1 = lstm_layer(emb, params["w_ih0"], params["w_hh0"],
                    params["b_ih0"], params["b_hh0"])
    h2 = lstm_layer(h1, params["w_ih1"], params["w_hh1"],
                    params["b_ih1"], params["b_hh1"])
    logits = jnp.maximum(h2 @ params["w_fc"].T + params["b_fc"], 0.0)
    return jax.nn.log_softmax(logits, axis=1)


if __name__ == "__main__":
    vocab_len = 128       # multiple of 128 -> lane-dense one-hot / logits
    embedding_dim = 32
    hidden_dim = 32       # 4*H = 128 -> gate rows fill exactly one vreg row
    seq_len = 8           # one f32 vreg worth of sublanes

    key = jax.random.PRNGKey(0)
    k_params, k_sent = jax.random.split(key)
    params = make_params(k_params, vocab_len, embedding_dim, hidden_dim)
    kparams = prepare_kernel_params(params)          # one-time, off the hot path
    sentence = jax.random.randint(k_sent, (seq_len,), 0, vocab_len, dtype=jnp.int32)

    out = rnn_model_forward(sentence, kparams)
    out = jax.block_until_ready(out)

    ref = reference_forward(sentence, params)
    np.testing.assert_allclose(np.asarray(out), np.asarray(ref),
                               rtol=2e-3, atol=2e-3)
    print("KERNEL_OK")
</pallas_src>

<mosaic_0001>
module attributes {stable_mosaic.version = 11 : i64} {
  func.func @rnn_lstm_kernel(%arg0: memref<8x1xi32, #tpu.memory_space<vmem>>, %arg1: memref<128x32xf32, #tpu.memory_space<vmem>>, %arg2: memref<32x128xf32, #tpu.memory_space<vmem>>, %arg3: memref<32x128xf32, #tpu.memory_space<vmem>>, %arg4: memref<1x128xf32, #tpu.memory_space<vmem>>, %arg5: memref<64x128xf32, #tpu.memory_space<vmem>>, %arg6: memref<1x128xf32, #tpu.memory_space<vmem>>, %arg7: memref<32x128xf32, #tpu.memory_space<vmem>>, %arg8: memref<1x128xf32, #tpu.memory_space<vmem>>, %arg9: memref<8x128xf32, #tpu.memory_space<vmem>>) attributes {dimension_semantics = [], scalar_prefetch = 0 : i64, scratch_operands = 0 : i64, tpu.core_type = #tpu.core_type<tc>} {
    %c0 = arith.constant 0 : index
    %c0_0 = arith.constant 0 : index
    %0 = vector.load %arg0[%c0, %c0_0] : memref<8x1xi32, #tpu.memory_space<vmem>>, vector<8x1xi32>
    %1 = tpu.iota {dimensions = array<i32: 1>} : vector<8x128xi32>
    %2 = vector.broadcast %0 : vector<8x1xi32> to vector<8x128xi32>
    %3 = arith.cmpi eq, %1, %2 : vector<8x128xi32>
    %4 = arith.extui %3 : vector<8x128xi1> to vector<8x128xi32>
    %5 = arith.sitofp %4 : vector<8x128xi32> to vector<8x128xf32>
    %c0_1 = arith.constant 0 : index
    %c0_2 = arith.constant 0 : index
    %6 = vector.load %arg1[%c0_1, %c0_2] : memref<128x32xf32, #tpu.memory_space<vmem>>, vector<128x32xf32>
    %cst = arith.constant dense<0.000000e+00> : vector<8x32xf32>
    %7 = tpu.matmul %5, %6, %cst {dimension_numbers = #tpu.dot_dimension_numbers<[1], [0], [0], [1], [0, 0, 1, 1], [], []>} : vector<8x128xf32>, vector<128x32xf32>, vector<8x32xf32> -> vector<8x32xf32>
    %c0_3 = arith.constant 0 : index
    %c0_4 = arith.constant 0 : index
    %8 = vector.load %arg2[%c0_3, %c0_4] : memref<32x128xf32, #tpu.memory_space<vmem>>, vector<32x128xf32>
    %cst_5 = arith.constant dense<0.000000e+00> : vector<8x128xf32>
    %9 = tpu.matmul %7, %8, %cst_5 {dimension_numbers = #tpu.dot_dimension_numbers<[1], [0], [0], [1], [0, 0, 1, 1], [], []>} : vector<8x32xf32>, vector<32x128xf32>, vector<8x128xf32> -> vector<8x128xf32>
    %c0_6 = arith.constant 0 : index
    %c0_7 = arith.constant 0 : index
    %10 = vector.load %arg4[%c0_6, %c0_7] : memref<1x128xf32, #tpu.memory_space<vmem>>, vector<1x128xf32>
    %11 = vector.broadcast %10 : vector<1x128xf32> to vector<8x128xf32>
    %12 = arith.addf %9, %11 : vector<8x128xf32>
    %c0_8 = arith.constant 0 : index
    %c0_9 = arith.constant 0 : index
    %13 = vector.load %arg3[%c0_8, %c0_9] : memref<32x128xf32, #tpu.memory_space<vmem>>, vector<32x128xf32>
    %c0_10 = arith.constant 0 : index
    %c0_11 = arith.constant 0 : index
    %14 = vector.load %arg5[%c0_10, %c0_11] : memref<64x128xf32, #tpu.memory_space<vmem>>, vector<64x128xf32>
    %c0_12 = arith.constant 0 : index
    %c0_13 = arith.constant 0 : index
    %15 = vector.load %arg6[%c0_12, %c0_13] : memref<1x128xf32, #tpu.memory_space<vmem>>, vector<1x128xf32>
    %cst_14 = arith.constant 5.000000e-01 : f32
    %16 = vector.broadcast %cst_14 : f32 to vector<1x32xf32>
    %cst_15 = arith.constant 1.000000e+00 : f32
    %17 = vector.broadcast %cst_15 : f32 to vector<1x32xf32>
    %18 = tpu.concatenate %16, %16, %17, %16 in 1 : vector<1x32xf32>, vector<1x32xf32>, vector<1x32xf32>, vector<1x32xf32> -> vector<1x128xf32>
    %cst_16 = arith.constant 0.000000e+00 : f32
    %19 = vector.broadcast %cst_16 : f32 to vector<1x32xf32>
    %20 = tpu.concatenate %16, %16, %19, %16 in 1 : vector<1x32xf32>, vector<1x32xf32>, vector<1x32xf32>, vector<1x32xf32> -> vector<1x128xf32>
    %cst_17 = arith.constant 0.000000e+00 : f32
    %21 = vector.broadcast %cst_17 : f32 to vector<1x32xf32>
    %22 = vector.extract_strided_slice %12 {offsets = [0, 0], sizes = [1, 128], strides = [1, 1]} : vector<8x128xf32> to vector<1x128xf32>
    %cst_18 = arith.constant dense<0.000000e+00> : vector<1x128xf32>
    %23 = tpu.matmul %21, %13, %cst_18 {dimension_numbers = #tpu.dot_dimension_numbers<[1], [0], [0], [1], [0, 0, 1, 1], [], []>} : vector<1x32xf32>, vector<32x128xf32>, vector<1x128xf32> -> vector<1x128xf32>
    %24 = arith.addf %22, %23 : vector<1x128xf32>
    %25 = math.tanh %24 : vector<1x128xf32>
    %26 = arith.mulf %18, %25 : vector<1x128xf32>
    %27 = arith.addf %26, %20 : vector<1x128xf32>
    %28 = vector.extract_strided_slice %27 {offsets = [0, 0], sizes = [1, 32], strides = [1, 1]} : vector<1x128xf32> to vector<1x32xf32>
    %29 = vector.extract_strided_slice %27 {offsets = [0, 32], sizes = [1, 32], strides = [1, 1]} : vector<1x128xf32> to vector<1x32xf32>
    %30 = vector.extract_strided_slice %27 {offsets = [0, 64], sizes = [1, 32], strides = [1, 1]} : vector<1x128xf32> to vector<1x32xf32>
    %31 = vector.extract_strided_slice %27 {offsets = [0, 96], sizes = [1, 32], strides = [1, 1]} : vector<1x128xf32> to vector<1x32xf32>
    %32 = arith.mulf %29, %21 : vector<1x32xf32>
    %33 = arith.mulf %28, %30 : vector<1x32xf32>
    %34 = arith.addf %32, %33 : vector<1x32xf32>
    %35 = math.tanh %34 : vector<1x32xf32>
    %36 = arith.mulf %31, %35 : vector<1x32xf32>
    %37 = vector.extract_strided_slice %12 {offsets = [1, 0], sizes = [1, 128], strides = [1, 1]} : vector<8x128xf32> to vector<1x128xf32>
    %cst_19 = arith.constant dense<0.000000e+00> : vector<1x128xf32>
    %38 = tpu.matmul %36, %13, %cst_19 {dimension_numbers = #tpu.dot_dimension_numbers<[1], [0], [0], [1], [0, 0, 1, 1], [], []>} : vector<1x32xf32>, vector<32x128xf32>, vector<1x128xf32> -> vector<1x128xf32>
    %39 = arith.addf %37, %38 : vector<1x128xf32>
    %40 = math.tanh %39 : vector<1x128xf32>
    %41 = arith.mulf %18, %40 : vector<1x128xf32>
    %42 = arith.addf %41, %20 : vector<1x128xf32>
    %43 = vector.extract_strided_slice %42 {offsets = [0, 0], sizes = [1, 32], strides = [1, 1]} : vector<1x128xf32> to vector<1x32xf32>
    %44 = vector.extract_strided_slice %42 {offsets = [0, 32], sizes = [1, 32], strides = [1, 1]} : vector<1x128xf32> to vector<1x32xf32>
    %45 = vector.extract_strided_slice %42 {offsets = [0, 64], sizes = [1, 32], strides = [1, 1]} : vector<1x128xf32> to vector<1x32xf32>
    %46 = vector.extract_strided_slice %42 {offsets = [0, 96], sizes = [1, 32], strides = [1, 1]} : vector<1x128xf32> to vector<1x32xf32>
    %47 = arith.mulf %44, %34 : vector<1x32xf32>
    %48 = arith.mulf %43, %45 : vector<1x32xf32>
    %49 = arith.addf %47, %48 : vector<1x32xf32>
    %50 = math.tanh %49 : vector<1x32xf32>
    %51 = arith.mulf %46, %50 : vector<1x32xf32>
    %52 = tpu.concatenate %36, %21 in 1 : vector<1x32xf32>, vector<1x32xf32> -> vector<1x64xf32>
    %cst_20 = arith.constant dense<0.000000e+00> : vector<1x128xf32>
    %53 = tpu.matmul %52, %14, %cst_20 {dimension_numbers = #tpu.dot_dimension_numbers<[1], [0], [0], [1], [0, 0, 1, 1], [], []>} : vector<1x64xf32>, vector<64x128xf32>, vector<1x128xf32> -> vector<1x128xf32>
    %54 = arith.addf %53, %15 : vector<1x128xf32>
    %55 = math.tanh %54 : vector<1x128xf32>
    %56 = arith.mulf %18, %55 : vector<1x128xf32>
    %57 = arith.addf %56, %20 : vector<1x128xf32>
    %58 = vector.extract_strided_slice %57 {offsets = [0, 0], sizes = [1, 32], strides = [1, 1]} : vector<1x128xf32> to vector<1x32xf32>
    %59 = vector.extract_strided_slice %57 {offsets = [0, 32], sizes = [1, 32], strides = [1, 1]} : vector<1x128xf32> to vector<1x32xf32>
    %60 = vector.extract_strided_slice %57 {offsets = [0, 64], sizes = [1, 32], strides = [1, 1]} : vector<1x128xf32> to vector<1x32xf32>
    %61 = vector.extract_strided_slice %57 {offsets = [0, 96], sizes = [1, 32], strides = [1, 1]} : vector<1x128xf32> to vector<1x32xf32>
    %62 = arith.mulf %59, %21 : vector<1x32xf32>
    %63 = arith.mulf %58, %60 : vector<1x32xf32>
    %64 = arith.addf %62, %63 : vector<1x32xf32>
    %65 = math.tanh %64 : vector<1x32xf32>
    %66 = arith.mulf %61, %65 : vector<1x32xf32>
    %67 = vector.extract_strided_slice %12 {offsets = [2, 0], sizes = [1, 128], strides = [1, 1]} : vector<8x128xf32> to vector<1x128xf32>
    %cst_21 = arith.constant dense<0.000000e+00> : vector<1x128xf32>
    %68 = tpu.matmul %51, %13, %cst_21 {dimension_numbers = #tpu.dot_dimension_numbers<[1], [0], [0], [1], [0, 0, 1, 1], [], []>} : vector<1x32xf32>, vector<32x128xf32>, vector<1x128xf32> -> vector<1x128xf32>
    %69 = arith.addf %67, %68 : vector<1x128xf32>
    %70 = math.tanh %69 : vector<1x128xf32>
    %71 = arith.mulf %18, %70 : vector<1x128xf32>
    %72 = arith.addf %71, %20 : vector<1x128xf32>
    %73 = vector.extract_strided_slice %72 {offsets = [0, 0], sizes = [1, 32], strides = [1, 1]} : vector<1x128xf32> to vector<1x32xf32>
    %74 = vector.extract_strided_slice %72 {offsets = [0, 32], sizes = [1, 32], strides = [1, 1]} : vector<1x128xf32> to vector<1x32xf32>
    %75 = vector.extract_strided_slice %72 {offsets = [0, 64], sizes = [1, 32], strides = [1, 1]} : vector<1x128xf32> to vector<1x32xf32>
    %76 = vector.extract_strided_slice %72 {offsets = [0, 96], sizes = [1, 32], strides = [1, 1]} : vector<1x128xf32> to vector<1x32xf32>
    %77 = arith.mulf %74, %49 : vector<1x32xf32>
    %78 = arith.mulf %73, %75 : vector<1x32xf32>
    %79 = arith.addf %77, %78 : vector<1x32xf32>
    %80 = math.tanh %79 : vector<1x32xf32>
    %81 = arith.mulf %76, %80 : vector<1x32xf32>
    %82 = tpu.concatenate %51, %66 in 1 : vector<1x32xf32>, vector<1x32xf32> -> vector<1x64xf32>
    %cst_22 = arith.constant dense<0.000000e+00> : vector<1x128xf32>
    %83 = tpu.matmul %82, %14, %cst_22 {dimension_numbers = #tpu.dot_dimension_numbers<[1], [0], [0], [1], [0, 0, 1, 1], [], []>} : vector<1x64xf32>, vector<64x128xf32>, vector<1x128xf32> -> vector<1x128xf32>
    %84 = arith.addf %83, %15 : vector<1x128xf32>
    %85 = math.tanh %84 : vector<1x128xf32>
    %86 = arith.mulf %18, %85 : vector<1x128xf32>
    %87 = arith.addf %86, %20 : vector<1x128xf32>
    %88 = vector.extract_strided_slice %87 {offsets = [0, 0], sizes = [1, 32], strides = [1, 1]} : vector<1x128xf32> to vector<1x32xf32>
    %89 = vector.extract_strided_slice %87 {offsets = [0, 32], sizes = [1, 32], strides = [1, 1]} : vector<1x128xf32> to vector<1x32xf32>
    %90 = vector.extract_strided_slice %87 {offsets = [0, 64], sizes = [1, 32], strides = [1, 1]} : vector<1x128xf32> to vector<1x32xf32>
    %91 = vector.extract_strided_slice %87 {offsets = [0, 96], sizes = [1, 32], strides = [1, 1]} : vector<1x128xf32> to vector<1x32xf32>
    %92 = arith.mulf %89, %64 : vector<1x32xf32>
    %93 = arith.mulf %88, %90 : vector<1x32xf32>
    %94 = arith.addf %92, %93 : vector<1x32xf32>
    %95 = math.tanh %94 : vector<1x32xf32>
    %96 = arith.mulf %91, %95 : vector<1x32xf32>
    %97 = vector.extract_strided_slice %12 {offsets = [3, 0], sizes = [1, 128], strides = [1, 1]} : vector<8x128xf32> to vector<1x128xf32>
    %cst_23 = arith.constant dense<0.000000e+00> : vector<1x128xf32>
    %98 = tpu.matmul %81, %13, %cst_23 {dimension_numbers = #tpu.dot_dimension_numbers<[1], [0], [0], [1], [0, 0, 1, 1], [], []>} : vector<1x32xf32>, vector<32x128xf32>, vector<1x128xf32> -> vector<1x128xf32>
    %99 = arith.addf %97, %98 : vector<1x128xf32>
    %100 = math.tanh %99 : vector<1x128xf32>
    %101 = arith.mulf %18, %100 : vector<1x128xf32>
    %102 = arith.addf %101, %20 : vector<1x128xf32>
    %103 = vector.extract_strided_slice %102 {offsets = [0, 0], sizes = [1, 32], strides = [1, 1]} : vector<1x128xf32> to vector<1x32xf32>
    %104 = vector.extract_strided_slice %102 {offsets = [0, 32], sizes = [1, 32], strides = [1, 1]} : vector<1x128xf32> to vector<1x32xf32>
    %105 = vector.extract_strided_slice %102 {offsets = [0, 64], sizes = [1, 32], strides = [1, 1]} : vector<1x128xf32> to vector<1x32xf32>
    %106 = vector.extract_strided_slice %102 {offsets = [0, 96], sizes = [1, 32], strides = [1, 1]} : vector<1x128xf32> to vector<1x32xf32>
    %107 = arith.mulf %104, %79 : vector<1x32xf32>
    %108 = arith.mulf %103, %105 : vector<1x32xf32>
    %109 = arith.addf %107, %108 : vector<1x32xf32>
    %110 = math.tanh %109 : vector<1x32xf32>
    %111 = arith.mulf %106, %110 : vector<1x32xf32>
    %112 = tpu.concatenate %81, %96 in 1 : vector<1x32xf32>, vector<1x32xf32> -> vector<1x64xf32>
    %cst_24 = arith.constant dense<0.000000e+00> : vector<1x128xf32>
    %113 = tpu.matmul %112, %14, %cst_24 {dimension_numbers = #tpu.dot_dimension_numbers<[1], [0], [0], [1], [0, 0, 1, 1], [], []>} : vector<1x64xf32>, vector<64x128xf32>, vector<1x128xf32> -> vector<1x128xf32>
    %114 = arith.addf %113, %15 : vector<1x128xf32>
    %115 = math.tanh %114 : vector<1x128xf32>
    %116 = arith.mulf %18, %115 : vector<1x128xf32>
    %117 = arith.addf %116, %20 : vector<1x128xf32>
    %118 = vector.extract_strided_slice %117 {offsets = [0, 0], sizes = [1, 32], strides = [1, 1]} : vector<1x128xf32> to vector<1x32xf32>
    %119 = vector.extract_strided_slice %117 {offsets = [0, 32], sizes = [1, 32], strides = [1, 1]} : vector<1x128xf32> to vector<1x32xf32>
    %120 = vector.extract_strided_slice %117 {offsets = [0, 64], sizes = [1, 32], strides = [1, 1]} : vector<1x128xf32> to vector<1x32xf32>
    %121 = vector.extract_strided_slice %117 {offsets = [0, 96], sizes = [1, 32], strides = [1, 1]} : vector<1x128xf32> to vector<1x32xf32>
    %122 = arith.mulf %119, %94 : vector<1x32xf32>
    %123 = arith.mulf %118, %120 : vector<1x32xf32>
    %124 = arith.addf %122, %123 : vector<1x32xf32>
    %125 = math.tanh %124 : vector<1x32xf32>
    %126 = arith.mulf %121, %125 : vector<1x32xf32>
    %127 = vector.extract_strided_slice %12 {offsets = [4, 0], sizes = [1, 128], strides = [1, 1]} : vector<8x128xf32> to vector<1x128xf32>
    %cst_25 = arith.constant dense<0.000000e+00> : vector<1x128xf32>
    %128 = tpu.matmul %111, %13, %cst_25 {dimension_numbers = #tpu.dot_dimension_numbers<[1], [0], [0], [1], [0, 0, 1, 1], [], []>} : vector<1x32xf32>, vector<32x128xf32>, vector<1x128xf32> -> vector<1x128xf32>
    %129 = arith.addf %127, %128 : vector<1x128xf32>
    %130 = math.tanh %129 : vector<1x128xf32>
    %131 = arith.mulf %18, %130 : vector<1x128xf32>
    %132 = arith.addf %131, %20 : vector<1x128xf32>
    %133 = vector.extract_strided_slice %132 {offsets = [0, 0], sizes = [1, 32], strides = [1, 1]} : vector<1x128xf32> to vector<1x32xf32>
    %134 = vector.extract_strided_slice %132 {offsets = [0, 32], sizes = [1, 32], strides = [1, 1]} : vector<1x128xf32> to vector<1x32xf32>
    %135 = vector.extract_strided_slice %132 {offsets = [0, 64], sizes = [1, 32], strides = [1, 1]} : vector<1x128xf32> to vector<1x32xf32>
    %136 = vector.extract_strided_slice %132 {offsets = [0, 96], sizes = [1, 32], strides = [1, 1]} : vector<1x128xf32> to vector<1x32xf32>
    %137 = arith.mulf %134, %109 : vector<1x32xf32>
    %138 = arith.mulf %133, %135 : vector<1x32xf32>
    %139 = arith.addf %137, %138 : vector<1x32xf32>
    %140 = math.tanh %139 : vector<1x32xf32>
    %141 = arith.mulf %136, %140 : vector<1x32xf32>
    %142 = tpu.concatenate %111, %126 in 1 : vector<1x32xf32>, vector<1x32xf32> -> vector<1x64xf32>
    %cst_26 = arith.constant dense<0.000000e+00> : vector<1x128xf32>
    %143 = tpu.matmul %142, %14, %cst_26 {dimension_numbers = #tpu.dot_dimension_numbers<[1], [0], [0], [1], [0, 0, 1, 1], [], []>} : vector<1x64xf32>, vector<64x128xf32>, vector<1x128xf32> -> vector<1x128xf32>
    %144 = arith.addf %143, %15 : vector<1x128xf32>
    %145 = math.tanh %144 : vector<1x128xf32>
    %146 = arith.mulf %18, %145 : vector<1x128xf32>
    %147 = arith.addf %146, %20 : vector<1x128xf32>
    %148 = vector.extract_strided_slice %147 {offsets = [0, 0], sizes = [1, 32], strides = [1, 1]} : vector<1x128xf32> to vector<1x32xf32>
    %149 = vector.extract_strided_slice %147 {offsets = [0, 32], sizes = [1, 32], strides = [1, 1]} : vector<1x128xf32> to vector<1x32xf32>
    %150 = vector.extract_strided_slice %147 {offsets = [0, 64], sizes = [1, 32], strides = [1, 1]} : vector<1x128xf32> to vector<1x32xf32>
    %151 = vector.extract_strided_slice %147 {offsets = [0, 96], sizes = [1, 32], strides = [1, 1]} : vector<1x128xf32> to vector<1x32xf32>
    %152 = arith.mulf %149, %124 : vector<1x32xf32>
    %153 = arith.mulf %148, %150 : vector<1x32xf32>
    %154 = arith.addf %152, %153 : vector<1x32xf32>
    %155 = math.tanh %154 : vector<1x32xf32>
    %156 = arith.mulf %151, %155 : vector<1x32xf32>
    %157 = vector.extract_strided_slice %12 {offsets = [5, 0], sizes = [1, 128], strides = [1, 1]} : vector<8x128xf32> to vector<1x128xf32>
    %cst_27 = arith.constant dense<0.000000e+00> : vector<1x128xf32>
    %158 = tpu.matmul %141, %13, %cst_27 {dimension_numbers = #tpu.dot_dimension_numbers<[1], [0], [0], [1], [0, 0, 1, 1], [], []>} : vector<1x32xf32>, vector<32x128xf32>, vector<1x128xf32> -> vector<1x128xf32>
    %159 = arith.addf %157, %158 : vector<1x128xf32>
    %160 = math.tanh %159 : vector<1x128xf32>
    %161 = arith.mulf %18, %160 : vector<1x128xf32>
    %162 = arith.addf %161, %20 : vector<1x128xf32>
    %163 = vector.extract_strided_slice %162 {offsets = [0, 0], sizes = [1, 32], strides = [1, 1]} : vector<1x128xf32> to vector<1x32xf32>
    %164 = vector.extract_strided_slice %162 {offsets = [0, 32], sizes = [1, 32], strides = [1, 1]} : vector<1x128xf32> to vector<1x32xf32>
    %165 = vector.extract_strided_slice %162 {offsets = [0, 64], sizes = [1, 32], strides = [1, 1]} : vector<1x128xf32> to vector<1x32xf32>
    %166 = vector.extract_strided_slice %162 {offsets = [0, 96], sizes = [1, 32], strides = [1, 1]} : vector<1x128xf32> to vector<1x32xf32>
    %167 = arith.mulf %164, %139 : vector<1x32xf32>
    %168 = arith.mulf %163, %165 : vector<1x32xf32>
    %169 = arith.addf %167, %168 : vector<1x32xf32>
    %170 = math.tanh %169 : vector<1x32xf32>
    %171 = arith.mulf %166, %170 : vector<1x32xf32>
    %172 = tpu.concatenate %141, %156 in 1 : vector<1x32xf32>, vector<1x32xf32> -> vector<1x64xf32>
    %cst_28 = arith.constant dense<0.000000e+00> : vector<1x128xf32>
    %173 = tpu.matmul %172, %14, %cst_28 {dimension_numbers = #tpu.dot_dimension_numbers<[1], [0], [0], [1], [0, 0, 1, 1], [], []>} : vector<1x64xf32>, vector<64x128xf32>, vector<1x128xf32> -> vector<1x128xf32>
    %174 = arith.addf %173, %15 : vector<1x128xf32>
    %175 = math.tanh %174 : vector<1x128xf32>
    %176 = arith.mulf %18, %175 : vector<1x128xf32>
    %177 = arith.addf %176, %20 : vector<1x128xf32>
    %178 = vector.extract_strided_slice %177 {offsets = [0, 0], sizes = [1, 32], strides = [1, 1]} : vector<1x128xf32> to vector<1x32xf32>
    %179 = vector.extract_strided_slice %177 {offsets = [0, 32], sizes = [1, 32], strides = [1, 1]} : vector<1x128xf32> to vector<1x32xf32>
    %180 = vector.extract_strided_slice %177 {offsets = [0, 64], sizes = [1, 32], strides = [1, 1]} : vector<1x128xf32> to vector<1x32xf32>
    %181 = vector.extract_strided_slice %177 {offsets = [0, 96], sizes = [1, 32], strides = [1, 1]} : vector<1x128xf32> to vector<1x32xf32>
    %182 = arith.mulf %179, %154 : vector<1x32xf32>
    %183 = arith.mulf %178, %180 : vector<1x32xf32>
    %184 = arith.addf %182, %183 : vector<1x32xf32>
    %185 = math.tanh %184 : vector<1x32xf32>
    %186 = arith.mulf %181, %185 : vector<1x32xf32>
    %187 = vector.extract_strided_slice %12 {offsets = [6, 0], sizes = [1, 128], strides = [1, 1]} : vector<8x128xf32> to vector<1x128xf32>
    %cst_29 = arith.constant dense<0.000000e+00> : vector<1x128xf32>
    %188 = tpu.matmul %171, %13, %cst_29 {dimension_numbers = #tpu.dot_dimension_numbers<[1], [0], [0], [1], [0, 0, 1, 1], [], []>} : vector<1x32xf32>, vector<32x128xf32>, vector<1x128xf32> -> vector<1x128xf32>
    %189 = arith.addf %187, %188 : vector<1x128xf32>
    %190 = math.tanh %189 : vector<1x128xf32>
    %191 = arith.mulf %18, %190 : vector<1x128xf32>
    %192 = arith.addf %191, %20 : vector<1x128xf32>
    %193 = vector.extract_strided_slice %192 {offsets = [0, 0], sizes = [1, 32], strides = [1, 1]} : vector<1x128xf32> to vector<1x32xf32>
    %194 = vector.extract_strided_slice %192 {offsets = [0, 32], sizes = [1, 32], strides = [1, 1]} : vector<1x128xf32> to vector<1x32xf32>
    %195 = vector.extract_strided_slice %192 {offsets = [0, 64], sizes = [1, 32], strides = [1, 1]} : vector<1x128xf32> to vector<1x32xf32>
    %196 = vector.extract_strided_slice %192 {offsets = [0, 96], sizes = [1, 32], strides = [1, 1]} : vector<1x128xf32> to vector<1x32xf32>
    %197 = arith.mulf %194, %169 : vector<1x32xf32>
    %198 = arith.mulf %193, %195 : vector<1x32xf32>
    %199 = arith.addf %197, %198 : vector<1x32xf32>
    %200 = math.tanh %199 : vector<1x32xf32>
    %201 = arith.mulf %196, %200 : vector<1x32xf32>
    %202 = tpu.concatenate %171, %186 in 1 : vector<1x32xf32>, vector<1x32xf32> -> vector<1x64xf32>
    %cst_30 = arith.constant dense<0.000000e+00> : vector<1x128xf32>
    %203 = tpu.matmul %202, %14, %cst_30 {dimension_numbers = #tpu.dot_dimension_numbers<[1], [0], [0], [1], [0, 0, 1, 1], [], []>} : vector<1x64xf32>, vector<64x128xf32>, vector<1x128xf32> -> vector<1x128xf32>
    %204 = arith.addf %203, %15 : vector<1x128xf32>
    %205 = math.tanh %204 : vector<1x128xf32>
    %206 = arith.mulf %18, %205 : vector<1x128xf32>
    %207 = arith.addf %206, %20 : vector<1x128xf32>
    %208 = vector.extract_strided_slice %207 {offsets = [0, 0], sizes = [1, 32], strides = [1, 1]} : vector<1x128xf32> to vector<1x32xf32>
    %209 = vector.extract_strided_slice %207 {offsets = [0, 32], sizes = [1, 32], strides = [1, 1]} : vector<1x128xf32> to vector<1x32xf32>
    %210 = vector.extract_strided_slice %207 {offsets = [0, 64], sizes = [1, 32], strides = [1, 1]} : vector<1x128xf32> to vector<1x32xf32>
    %211 = vector.extract_strided_slice %207 {offsets = [0, 96], sizes = [1, 32], strides = [1, 1]} : vector<1x128xf32> to vector<1x32xf32>
    %212 = arith.mulf %209, %184 : vector<1x32xf32>
    %213 = arith.mulf %208, %210 : vector<1x32xf32>
    %214 = arith.addf %212, %213 : vector<1x32xf32>
    %215 = math.tanh %214 : vector<1x32xf32>
    %216 = arith.mulf %211, %215 : vector<1x32xf32>
    %217 = vector.extract_strided_slice %12 {offsets = [7, 0], sizes = [1, 128], strides = [1, 1]} : vector<8x128xf32> to vector<1x128xf32>
    %cst_31 = arith.constant dense<0.000000e+00> : vector<1x128xf32>
    %218 = tpu.matmul %201, %13, %cst_31 {dimension_numbers = #tpu.dot_dimension_numbers<[1], [0], [0], [1], [0, 0, 1, 1], [], []>} : vector<1x32xf32>, vector<32x128xf32>, vector<1x128xf32> -> vector<1x128xf32>
    %219 = arith.addf %217, %218 : vector<1x128xf32>
    %220 = math.tanh %219 : vector<1x128xf32>
    %221 = arith.mulf %18, %220 : vector<1x128xf32>
    %222 = arith.addf %221, %20 : vector<1x128xf32>
    %223 = vector.extract_strided_slice %222 {offsets = [0, 0], sizes = [1, 32], strides = [1, 1]} : vector<1x128xf32> to vector<1x32xf32>
    %224 = vector.extract_strided_slice %222 {offsets = [0, 32], sizes = [1, 32], strides = [1, 1]} : vector<1x128xf32> to vector<1x32xf32>
    %225 = vector.extract_strided_slice %222 {offsets = [0, 64], sizes = [1, 32], strides = [1, 1]} : vector<1x128xf32> to vector<1x32xf32>
    %226 = vector.extract_strided_slice %222 {offsets = [0, 96], sizes = [1, 32], strides = [1, 1]} : vector<1x128xf32> to vector<1x32xf32>
    %227 = arith.mulf %224, %199 : vector<1x32xf32>
    %228 = arith.mulf %223, %225 : vector<1x32xf32>
    %229 = arith.addf %227, %228 : vector<1x32xf32>
    %230 = math.tanh %229 : vector<1x32xf32>
    %231 = arith.mulf %226, %230 : vector<1x32xf32>
    %232 = tpu.concatenate %201, %216 in 1 : vector<1x32xf32>, vector<1x32xf32> -> vector<1x64xf32>
    %cst_32 = arith.constant dense<0.000000e+00> : vector<1x128xf32>
    %233 = tpu.matmul %232, %14, %cst_32 {dimension_numbers = #tpu.dot_dimension_numbers<[1], [0], [0], [1], [0, 0, 1, 1], [], []>} : vector<1x64xf32>, vector<64x128xf32>, vector<1x128xf32> -> vector<1x128xf32>
    %234 = arith.addf %233, %15 : vector<1x128xf32>
    %235 = math.tanh %234 : vector<1x128xf32>
    %236 = arith.mulf %18, %235 : vector<1x128xf32>
    %237 = arith.addf %236, %20 : vector<1x128xf32>
    %238 = vector.extract_strided_slice %237 {offsets = [0, 0], sizes = [1, 32], strides = [1, 1]} : vector<1x128xf32> to vector<1x32xf32>
    %239 = vector.extract_strided_slice %237 {offsets = [0, 32], sizes = [1, 32], strides = [1, 1]} : vector<1x128xf32> to vector<1x32xf32>
    %240 = vector.extract_strided_slice %237 {offsets = [0, 64], sizes = [1, 32], strides = [1, 1]} : vector<1x128xf32> to vector<1x32xf32>
    %241 = vector.extract_strided_slice %237 {offsets = [0, 96], sizes = [1, 32], strides = [1, 1]} : vector<1x128xf32> to vector<1x32xf32>
    %242 = arith.mulf %239, %214 : vector<1x32xf32>
    %243 = arith.mulf %238, %240 : vector<1x32xf32>
    %244 = arith.addf %242, %243 : vector<1x32xf32>
    %245 = math.tanh %244 : vector<1x32xf32>
    %246 = arith.mulf %241, %245 : vector<1x32xf32>
    %247 = tpu.concatenate %231, %246 in 1 : vector<1x32xf32>, vector<1x32xf32> -> vector<1x64xf32>
    %cst_33 = arith.constant dense<0.000000e+00> : vector<1x128xf32>
    %248 = tpu.matmul %247, %14, %cst_33 {dimension_numbers = #tpu.dot_dimension_numbers<[1], [0], [0], [1], [0, 0, 1, 1], [], []>} : vector<1x64xf32>, vector<64x128xf32>, vector<1x128xf32> -> vector<1x128xf32>
    %249 = arith.addf %248, %15 : vector<1x128xf32>
    %250 = math.tanh %249 : vector<1x128xf32>
    %251 = arith.mulf %18, %250 : vector<1x128xf32>
    %252 = arith.addf %251, %20 : vector<1x128xf32>
    %253 = vector.extract_strided_slice %252 {offsets = [0, 0], sizes = [1, 32], strides = [1, 1]} : vector<1x128xf32> to vector<1x32xf32>
    %254 = vector.extract_strided_slice %252 {offsets = [0, 32], sizes = [1, 32], strides = [1, 1]} : vector<1x128xf32> to vector<1x32xf32>
    %255 = vector.extract_strided_slice %252 {offsets = [0, 64], sizes = [1, 32], strides = [1, 1]} : vector<1x128xf32> to vector<1x32xf32>
    %256 = vector.extract_strided_slice %252 {offsets = [0, 96], sizes = [1, 32], strides = [1, 1]} : vector<1x128xf32> to vector<1x32xf32>
    %257 = arith.mulf %254, %244 : vector<1x32xf32>
    %258 = arith.mulf %253, %255 : vector<1x32xf32>
    %259 = arith.addf %257, %258 : vector<1x32xf32>
    %260 = math.tanh %259 : vector<1x32xf32>
    %261 = arith.mulf %256, %260 : vector<1x32xf32>
    %262 = tpu.concatenate %66, %96, %126, %156, %186, %216, %246, %261 in 0 : vector<1x32xf32>, vector<1x32xf32>, vector<1x32xf32>, vector<1x32xf32>, vector<1x32xf32>, vector<1x32xf32>, vector<1x32xf32>, vector<1x32xf32> -> vector<8x32xf32>
    %c0_34 = arith.constant 0 : index
    %c0_35 = arith.constant 0 : index
    %263 = vector.load %arg7[%c0_34, %c0_35] : memref<32x128xf32, #tpu.memory_space<vmem>>, vector<32x128xf32>
    %cst_36 = arith.constant dense<0.000000e+00> : vector<8x128xf32>
    %264 = tpu.matmul %262, %263, %cst_36 {dimension_numbers = #tpu.dot_dimension_numbers<[1], [0], [0], [1], [0, 0, 1, 1], [], []>} : vector<8x32xf32>, vector<32x128xf32>, vector<8x128xf32> -> vector<8x128xf32>
    %c0_37 = arith.constant 0 : index
    %c0_38 = arith.constant 0 : index
    %265 = vector.load %arg8[%c0_37, %c0_38] : memref<1x128xf32, #tpu.memory_space<vmem>>, vector<1x128xf32>
    %266 = vector.broadcast %265 : vector<1x128xf32> to vector<8x128xf32>
    %267 = arith.addf %264, %266 : vector<8x128xf32>
    %cst_39 = arith.constant 0.000000e+00 : f32
    %268 = vector.broadcast %cst_39 : f32 to vector<8x128xf32>
    %269 = arith.maximumf %267, %268 : vector<8x128xf32>
    %cst_40 = arith.constant dense<0xFF800000> : vector<8xf32>
    %270 = vector.multi_reduction <maximumf>, %269, %cst_40 [1] : vector<8x128xf32> to vector<8xf32>
    %271 = vector.shape_cast %270 : vector<8xf32> to vector<8x1xf32>
    %272 = vector.broadcast %271 : vector<8x1xf32> to vector<8x128xf32>
    %273 = arith.subf %269, %272 : vector<8x128xf32>
    %274 = math.exp %273 : vector<8x128xf32>
    %cst_41 = arith.constant dense<0.000000e+00> : vector<8xf32>
    %275 = vector.multi_reduction <add>, %274, %cst_41 [1] : vector<8x128xf32> to vector<8xf32>
    %276 = vector.shape_cast %275 : vector<8xf32> to vector<8x1xf32>
    %277 = math.log %276 : vector<8x1xf32>
    %278 = arith.addf %277, %271 : vector<8x1xf32>
    %279 = vector.broadcast %278 : vector<8x1xf32> to vector<8x128xf32>
    %280 = arith.subf %269, %279 : vector<8x128xf32>
    %c0_42 = arith.constant 0 : index
    %c0_43 = arith.constant 0 : index
    %281 = vector.load %arg9[%c0_42, %c0_43] : memref<8x128xf32, #tpu.memory_space<vmem>>, vector<8x128xf32>
    tpu.vector_store %arg9[%c0_42, %c0_43], %280 {strides = array<i32>} : memref<8x128xf32, #tpu.memory_space<vmem>>, vector<8x128xf32>,
    return
  }
}

</mosaic_0001>

<bundles_post_ra>
// kernel: rnn_model_forward.1
= control target key start
LH: loop header
LB: loop body
LE: loop exit
PB: predicated region body
PF: predicated region fallthrough
CT: control target
= control target key end

     0   :  { %v2528_v2 = vmov 0   ;;  %v2529_v3 = vmov 0.0   ;;  %vm2530_vm0 = vmmov 0   ;;  %s3207_s0 = inlined_call_operand.vmem [shape: s32[8,1], index: 0, kind: input, shape index: {}]   ;;  %s3208_s1 = inlined_call_operand.vmem [shape: f32[128,32], index: 1, kind: input, shape index: {}]   ;;  %s3209_s2 = inlined_call_operand.vmem [shape: f32[32,128], index: 2, kind: input, shape index: {}]   ;;  %s3210_s3 = inlined_call_operand.vmem [shape: f32[32,128], index: 3, kind: input, shape index: {}]   ;;  %s3211_s4 = inlined_call_operand.vmem [shape: f32[1,128], index: 4, kind: input, shape index: {}]   ;;  %s3212_s5 = inlined_call_operand.vmem [shape: f32[64,128], index: 5, kind: input, shape index: {}]   ;;  %s3213_s6 = inlined_call_operand.vmem [shape: f32[1,128], index: 6, kind: input, shape index: {}]   ;;  %s3214_s7 = inlined_call_operand.vmem [shape: f32[32,128], index: 7, kind: input, shape index: {}]   ;;  %s3215_s8 = inlined_call_operand.vmem [shape: f32[1,128], index: 8, kind: input, shape index: {}]   ;;  %s3216_s9 = inlined_call_operand.hbm [shape: f32[8,128], index: 9, kind: output, shape index: {}]  }
   0x1   :  { %v33_v0 = vld [vmem:[%s3207_s0] sm:$0xff]  ;;  %v57_v1 = vld [vmem:[%s3208_s1 + $0x78] sm:$0xff]  ;;  %2437 = vset.pattern.permute.xlu0 %v2528_v2  ;;  %2133 = vmatprep.subr.mxu0 %v2529_v3  ;;  %v56_v4 = vld [vmem:[%s3208_s1 + $0x70] sm:$0xff] }
   0x2   :  { %37 = vperm.xlu0 %2437, %v33_v0   ;;  %2134 = vmatpush3.msra.mxu0 %v57_v1  ;;  %v55_v5 = vld [vmem:[%s3208_s1 + $0x68] sm:$0xff]  ;;  %v54_v6 = vld [vmem:[%s3208_s1 + $0x60] sm:$0xff]  ;;  %v131_v7 = vld [vmem:[%s3209_s2 + $0x18] sm:$0xff] }
   0x3   :  { %2135 = vmatprep.subr.mxu0 %v2529_v3  ;;  %2165 = vmatprep.mubr.msk.f32.mxu0 %vm2530_vm0, %v2529_v3  ;;  %v130_v8 = vld [vmem:[%s3209_s2 + $0x10] sm:$0xff]  ;;  %v53_v9 = vld [vmem:[%s3208_s1 + $0x58] sm:$0xff]  ;;  %v129_v10 = vld [vmem:[%s3209_s2 + $0x8] sm:$0xff] }
   0x4   :  { %2136 = vmatpush3.msra.mxu0 %v56_v4  ;;  %2168 = vmatprep.subr.mxu1 %v2529_v3 }
   0x5   :  { %2137 = vmatprep.subr.mxu0 %v2529_v3  ;;  %2176 = vmatprep.mubr.msk.f32.mxu1 %vm2530_vm0, %v2529_v3 }
   0x6   :  { %2138 = vmatpush3.msra.mxu0 %v55_v5  ;;  %2169 = vmatpush3.msra.mxu1 %v131_v7 }
   0x7   :  { %2139 = vmatprep.subr.mxu0 %v2529_v3  ;;  %2170 = vmatprep.subr.mxu1 %v2529_v3 }
   0x8   :  { %14 = vsyncpa [#allocation3], 0  ;;  %2140 = vmatpush3.msra.mxu0 %v54_v6  ;;  %2171 = vmatpush3.msra.mxu1 %v130_v8  ;;  %v52_v11 = vld [vmem:[%s3208_s1 + $0x50] sm:$0xff]  ;;  %v128_v12 = vld [vmem:[%s3209_s2] sm:$0xff]  ;;  %v34_v23 = vlaneseq  ;;  %v2531_v26 = vmov 1.0   ;;  %vm139_vm2 = vcmask 261120  }
   0x9   :  { %2141 = vmatprep.subr.mxu0 %v2529_v3  ;;  %2172 = vmatprep.subr.mxu1 %v2529_v3  ;;  %v51_v13 = vld [vmem:[%s3208_s1 + $0x48] sm:$0xff]  ;;  %v50_v14 = vld [vmem:[%s3208_s1 + $0x40] sm:$0xff]  ;;  %v49_v15 = vld [vmem:[%s3208_s1 + $0x38] sm:$0xff]  ;;  %vm226_vm3 = vcmask 523264   ;;  %vm228_vm4 = vcmask 785408   ;;  %s2533_s13 = smov 32  }
   0xa   :  { %2142 = vmatpush3.msra.mxu0 %v53_v9  ;;  %2173 = vmatpush3.msra.mxu1 %v129_v10  ;;  %v48_v16 = vld [vmem:[%s3208_s1 + $0x30] sm:$0xff]  ;;  %v47_v17 = vld [vmem:[%s3208_s1 + $0x28] sm:$0xff]  ;;  %v46_v18 = vld [vmem:[%s3208_s1 + $0x20] sm:$0xff]  ;;  %v35_v24 = vand.u32 127, %v34_v23  ;;  %v227_v40 = vsel %vm226_vm3, 0.5, %v2531_v26  ;;  %v230_v41 = vsel %vm226_vm3, 0.5, %v2529_v3 }
   0xb   :  { %2143 = vmatprep.subr.mxu0 %v2529_v3  ;;  %2174 = vmatprep.subr.mxu1 %v2529_v3  ;;  %v45_v19 = vld [vmem:[%s3208_s1 + $0x18] sm:$0xff]  ;;  %v44_v20 = vld [vmem:[%s3208_s1 + $0x10] sm:$0xff]  ;;  %v43_v21 = vld [vmem:[%s3208_s1 + $0x8] sm:$0xff]  ;;  %v2735_v42 = vsel %vm228_vm4, %v227_v40, 0.5  ;;  %v2737_v44 = vsel %vm228_vm4, %v230_v41, 0.5  ;;  %vm1846_vm5 = vcmask 1040384  }
   0xc   :  { %2144 = vmatpush3.msra.mxu0 %v52_v11  ;;  %2175 = vmatpush3.msra.mxu1 %v128_v12  ;;  %v42_v22 = vld [vmem:[%s3208_s1] sm:$0xff]  ;;  %v2679_v27 = vld [vmem:[%s3210_s3 + $0x18] sm:$0xff]  ;;  %v2686_v28 = vld [vmem:[%s3210_s3 + $0x10] sm:$0xff]  ;;  %vm1848_vm6 = vcmask 1041408   ;;  %vm1850_vm7 = vcmask 1042432   ;;  %vm1852_vm8 = vcmask 1043456  }
   0xd   :  { %2145 = vmatprep.subr.mxu0 %v2529_v3  ;;  %2179 = vmatprep.subr.mxu1 %v2529_v3  ;;  %v2692_v29 = vld [vmem:[%s3210_s3 + $0x8] sm:$0xff]  ;;  %v2699_v30 = vld [vmem:[%s3210_s3] sm:$0xff]  ;;  %v2751_v55 = vld [vmem:[%s3212_s5 + $0x38] sm:$0xff]  ;;  %vm1854_vm9 = vcmask 1044480   ;;  %vm1856_vm10 = vcmask 1045504   ;;  %vm1858_vm11 = vcmask 1046528  }
   0xe   :  { %2146 = vmatpush3.msra.mxu0 %v51_v13  ;;  %v1975_v35 = vld [vmem:[%s3211_s4] ss:$0 sm:$0xff]  ;;  %s2532_s4 = smov 64   ;;  %v2757_v57 = vld [vmem:[%s3212_s5 + $0x30] sm:$0xff]  ;;  %v2766_v58 = vld [vmem:[%s3212_s5 + $0x28] sm:$0xff] }
   0xf   :  { %2147 = vmatprep.subr.mxu0 %v2529_v3  ;;  %v2773_v59 = vld [vmem:[%s3212_s5 + $0x20] sm:$0xff]  ;;  %v2780_v60 = vld [vmem:[%s3212_s5 + $0x18] sm:$0xff]  ;;  %v2787_v61 = vld [vmem:[%s3212_s5 + $0x10] sm:$0xff] }
  0x10   :  { %2148 = vmatpush3.msra.mxu0 %v50_v14  ;;  %v2794_v62 = vld [vmem:[%s3212_s5 + $0x8] sm:$0xff]  ;;  %v2801_v63 = vld [vmem:[%s3212_s5] sm:$0xff] }
  0x11   :  { %2149 = vmatprep.subr.mxu0 %v2529_v3  ;;  %v2823_v6 = vld [vmem:[%s3213_s6] sm:$0x1] }
  0x12   :  { %2150 = vmatpush3.msra.mxu0 %v49_v15 }
  0x13   :  { %2151 = vmatprep.subr.mxu0 %v2529_v3 }
  0x14   :  { %2152 = vmatpush3.msra.mxu0 %v48_v16 }
  0x15   :  { %2153 = vmatprep.subr.mxu0 %v2529_v3 }
  0x16   :  { %2154 = vmatpush3.msra.mxu0 %v47_v17 }
  0x17   :  { %2155 = vmatprep.subr.mxu0 %v2529_v3 }
  0x18   :  { %2156 = vmatpush3.msra.mxu0 %v46_v18 }
  0x19   :  { %2157 = vmatprep.subr.mxu0 %v2529_v3 }
  0x1a   :  { %2158 = vmatpush3.msra.mxu0 %v45_v19 }
  0x1b   :  { %2159 = vmatprep.subr.mxu0 %v2529_v3 }
  0x1c   :  { %2160 = vmatpush3.msra.mxu0 %v44_v20 }
  0x1d   :  { %2161 = vmatprep.subr.mxu0 %v2529_v3 }
  0x1e   :  { %2162 = vmatpush3.msra.mxu0 %v43_v21 }
  0x1f   :  { %2163 = vmatprep.subr.mxu0 %v2529_v3 }
  0x20   :  { %2164 = vmatpush3.msra.mxu0 %v42_v22 }
  0x21   :  { %2220 = vmatprep.subr.mxu0 %v2529_v3 }
  0x7d   :  { %v38_v25 = vpop.permute.xlu0 %37 }
  0x7e   :  { %vm39_vm1 = vcmp.eq.s32.totalorder %v35_v24, %v38_v25 }
  0x7f   :  { %2166 = vmatmul.mubr.msk.f32.vlgmr.msra.gmra.mxu0 %vm39_vm1, %v2531_v26 }
  0x80   :  { %2228 = vmatprep.mubr.msk.f32.mxu0 %vm2530_vm0, %v2529_v3  ;;  %2221 = vmatpush3.msra.mxu0 %v2679_v27 }
  0x81   :  { %2222 = vmatprep.subr.mxu0 %v2529_v3 }
  0x82   :  { %2223 = vmatpush3.msra.mxu0 %v2686_v28 }
  0x83   :  { %2224 = vmatprep.subr.mxu0 %v2529_v3 }
  0x84   :  { %2225 = vmatpush3.msra.mxu0 %v2692_v29 }
  0x85   :  { %2226 = vmatprep.subr.mxu0 %v2529_v3 }
  0x86   :  { %2227 = vmatpush3.msra.mxu0 %v2699_v30 }
  0x87   :  { %2231 = vmatprep.subr.mxu0 %v2529_v3 }
 0x13f   :  { %v124_v31 = vpop.f32.mrf.mxu0 }
 0x140   :  { %2177 = vmatmul.mubr.msk.f32.vlgmr.msra.gmra.mxu1 %vm139_vm2, %v124_v31 }
 0x141   :  { %2180 = vmatpush3.msra.mxu1 %v2679_v27  ;;  %v2167_v32 = vpop.f32.mrf.mxu0  ;;  %2187 = vmatprep.mubr.msk.f32.mxu1 %vm2530_vm0, %v2529_v3 }
 0x142   :  { %2181 = vmatprep.subr.mxu1 %v2529_v3 }
 0x143   :  { %2182 = vmatpush3.msra.mxu1 %v2686_v28 }
 0x144   :  { %2183 = vmatprep.subr.mxu1 %v2529_v3 }
 0x145   :  { %2184 = vmatpush3.msra.mxu1 %v2692_v29 }
 0x146   :  { %2185 = vmatprep.subr.mxu1 %v2529_v3 }
 0x147   :  { %2186 = vmatpush3.msra.mxu1 %v2699_v30 }
 0x148   :  { %2188 = vmatmul.mubr.f32.vlgmr.msra.gmra.mxu1 %v2529_v3  ;;  %2190 = vmatprep.subr.mxu1 %v2529_v3 }
 0x149   :  { %2191 = vmatpush3.msra.mxu1 %v2679_v27  ;;  %2198 = vmatprep.mubr.msk.f32.mxu1 %vm2530_vm0, %v2529_v3 }
 0x14a   :  { %2192 = vmatprep.subr.mxu1 %v2529_v3 }
 0x14b   :  { %2193 = vmatpush3.msra.mxu1 %v2686_v28 }
 0x14c   :  { %2194 = vmatprep.subr.mxu1 %v2529_v3 }
 0x14d   :  { %2195 = vmatpush3.msra.mxu1 %v2692_v29 }
 0x14e   :  { %2196 = vmatprep.subr.mxu1 %v2529_v3 }
 0x14f   :  { %2197 = vmatpush3.msra.mxu1 %v2699_v30 }
 0x150   :  { %2201 = vmatprep.subr.mxu1 %v2529_v3 }
 0x200   :  { %v209_v33 = vpop.f32.mrf.mxu1 }
 0x201   :  { %v2729_v36 = vadd.f32 %v1975_v35, %v209_v33 }
 0x202   :  { %v2178_v34 = vpop.f32.mrf.mxu1 }
 0x208   :  { %v301_v37 = vpop.f32.mrf.mxu1 }
 0x209   :  { %v305_v38 = vadd.f32 %v301_v37, %v2729_v36 }
 0x20a   :  { %v2189_v39 = vpop.f32.mrf.mxu1 }
 0x20b   :  { %2438 = vtanh.f32 %v305_v38 }
 0x218   :  { %v2439_v43 = vpop.eup %2438 }
 0x219   :  { %v307_v45 = vmul.f32 %v2439_v43, %v2735_v42 }
 0x21b   :  { %v308_v46 = vadd.f32 %v307_v45, %v2737_v44 }
 0x21d   :  { %311 = vrot.lane.b32.xlu0 %v308_v46, %s2532_s4  ;;  %v309_v49 = vmul.f32 0.0, %v308_v46 }
 0x28f   :  { %v312_v47 = vpop.permute.xlu0 %311 }
 0x290   :  { %v314_v48 = vmul.f32 %v312_v47, %v308_v46 }
 0x292   :  { %316 = vrot.lane.b32.xlu1 %v314_v48, %s2533_s13 }
 0x304   :  { %v317_v50 = vpop.permute.xlu1 %316 }
 0x305   :  { %v2743_v51 = vadd.f32 %v317_v50, %v309_v49 }
 0x307   :  { %2440 = vtanh.f32 %v2743_v51 }
 0x314   :  { %v2441_v52 = vpop.eup %2440 }
 0x315   :  { %322 = vrot.lane.b32.xlu1 %v2441_v52, %s2532_s4 }
 0x387   :  { %v323_v53 = vpop.permute.xlu1 %322 }
 0x388   :  { %v325_v54 = vmul.f32 %v323_v53, %v308_v46 }
 0x38a   :  { %327 = vrot.lane.b32.xlu0 %v325_v54, %s2533_s13 }
 0x3fc   :  { %v328_v56 = vpop.permute.xlu0 %327 }
 0x3fd   :  { %2199 = vmatmul.mubr.msk.f32.vlgmr.msra.gmra.mxu1 %vm139_vm2, %v328_v56  ;;  %v429_v0 = vsel %vm139_vm2, %v328_v56, 0.0 }
 0x3fe   :  { %2202 = vmatpush3.msra.mxu1 %v2751_v55  ;;  %2217 = vmatprep.mubr.msk.f32.mxu1 %vm2530_vm0, %v2529_v3 }
 0x3ff   :  { %2203 = vmatprep.subr.mxu1 %v2529_v3 }
 0x400   :  { %2204 = vmatpush3.msra.mxu1 %v2757_v57 }
 0x401   :  { %2205 = vmatprep.subr.mxu1 %v2529_v3 }
 0x402   :  { %2206 = vmatpush3.msra.mxu1 %v2766_v58 }
 0x403   :  { %2207 = vmatprep.subr.mxu1 %v2529_v3 }
 0x404   :  { %2208 = vmatpush3.msra.mxu1 %v2773_v59 }
 0x405   :  { %2209 = vmatprep.subr.mxu1 %v2529_v3 }
 0x406   :  { %2210 = vmatpush3.msra.mxu1 %v2780_v60 }
 0x407   :  { %2211 = vmatprep.subr.mxu1 %v2529_v3 }
 0x408   :  { %2212 = vmatpush3.msra.mxu1 %v2787_v61 }
 0x409   :  { %2213 = vmatprep.subr.mxu1 %v2529_v3 }
 0x40a   :  { %2214 = vmatpush3.msra.mxu1 %v2794_v62 }
 0x40b   :  { %2215 = vmatprep.subr.mxu1 %v2529_v3 }
 0x40c   :  { %2216 = vmatpush3.msra.mxu1 %v2801_v63 }
 0x40d   :  { %2218 = vmatmul.mubr.msk.f32.vlgmr.msra.gmra.mxu1 %vm226_vm3, %v429_v0  ;;  %2250 = vmatprep.subr.mxu1 %v2529_v3 }
 0x40e   :  { %2251 = vmatpush3.msra.mxu1 %v2679_v27  ;;  %2258 = vmatprep.mubr.msk.f32.mxu1 %vm2530_vm0, %v2529_v3 }
 0x40f   :  { %2252 = vmatprep.subr.mxu1 %v2529_v3 }
 0x410   :  { %2253 = vmatpush3.msra.mxu1 %v2686_v28 }
 0x411   :  { %2254 = vmatprep.subr.mxu1 %v2529_v3 }
 0x412   :  { %2255 = vmatpush3.msra.mxu1 %v2692_v29 }
 0x413   :  { %2256 = vmatprep.subr.mxu1 %v2529_v3 }
 0x414   :  { %2257 = vmatpush3.msra.mxu1 %v2699_v30 }
 0x415   :  { %2261 = vmatprep.subr.mxu1 %v2529_v3 }
 0x4bd   :  { %v397_v1 = vpop.f32.mrf.mxu1 }
 0x4be   :  { %v402_v2 = vrot.slane %v397_v1, 7 }
 0x4bf   :  { %v2200_v4 = vpop.f32.mrf.mxu1 }
 0x4c0   :  { %v404_v5 = vadd.f32 %v402_v2, %v2729_v36 }
 0x4c2   :  { %2442 = vtanh.f32 %v404_v5 }
 0x4cd   :  { %v499_v7 = vpop.f32.mrf.mxu1 }
 0x4ce   :  { %v500_v8 = vadd.f32 %v499_v7, %v2823_v6 }
 0x4cf   :  { %v2443_v9 = vpop.eup %2442  ;;  %v2219_v10 = vpop.f32.mrf.mxu1 }
 0x4d0   :  { %v407_v11 = vrot.slane %v2443_v9, 1  ;;  %2444 = vtanh.f32 %v500_v8 }
 0x4d2   :  { %v409_v12 = vmul.f32 %v407_v11, %v2735_v42 }
 0x4d4   :  { %v410_v13 = vadd.f32 %v409_v12, %v2737_v44 }
 0x4d6   :  { %413 = vrot.lane.b32.xlu1 %v410_v13, %s2532_s4  ;;  %v411_v21 = vmul.f32 %v410_v13, %v2743_v51 }
 0x4dd   :  { %v2445_v14 = vpop.eup %2444 }
 0x4de   :  { %v504_v15 = vmul.f32 %v2445_v14, %v2735_v42 }
 0x4e0   :  { %v505_v16 = vadd.f32 %v504_v15, %v2737_v44 }
 0x4e2   :  { %508 = vrot.lane.b32.xlu0 %v505_v16, %s2532_s4  ;;  %v506_v24 = vmul.f32 0.0, %v505_v16 }
 0x548   :  { %v414_v17 = vpop.permute.xlu1 %413 }
 0x549   :  { %v416_v18 = vmul.f32 %v414_v17, %v410_v13 }
 0x54b   :  { %418 = vrot.lane.b32.xlu1 %v416_v18, %s2533_s13 }
 0x554   :  { %v509_v19 = vpop.permute.xlu0 %508 }
 0x555   :  { %v511_v20 = vmul.f32 %v509_v19, %v505_v16 }
 0x557   :  { %513 = vrot.lane.b32.xlu0 %v511_v20, %s2533_s13 }
 0x5bd   :  { %v419_v22 = vpop.permute.xlu1 %418 }
 0x5be   :  { %v2835_v23 = vadd.f32 %v419_v22, %v411_v21 }
 0x5c0   :  { %2446 = vtanh.f32 %v2835_v23 }
 0x5c9   :  { %v514_v25 = vpop.permute.xlu0 %513 }
 0x5ca   :  { %v2838_v26 = vadd.f32 %v514_v25, %v506_v24 }
 0x5cc   :  { %2448 = vtanh.f32 %v2838_v26 }
 0x5cd   :  { %v2447_v31 = vpop.eup %2446 }
 0x5ce   :  { %424 = vrot.lane.b32.xlu1 %v2447_v31, %s2532_s4 }
 0x5d9   :  { %v2449_v32 = vpop.eup %2448 }
 0x5da   :  { %519 = vrot.lane.b32.xlu0 %v2449_v32, %s2532_s4 }
 0x640   :  { %v425_v33 = vpop.permute.xlu1 %424 }
 0x641   :  { %v427_v34 = vmul.f32 %v425_v33, %v410_v13 }
 0x643   :  { %524 = vrot.lane.b32.xlu1 %v427_v34, %s2533_s13 }
 0x64c   :  { %v520_v35 = vpop.permute.xlu0 %519 }
 0x64d   :  { %v2844_v37 = vmul.f32 %v520_v35, %v505_v16 }
 0x64f   :  { %627 = vrot.lane.b32.xlu0 %v2844_v37, %s2532_s4 }
 0x6b5   :  { %v525_v38 = vpop.permute.xlu1 %524 }
 0x6b6   :  { %2229 = vmatmul.mubr.msk.f32.vlgmr.msra.gmra.mxu0 %vm139_vm2, %v525_v38 }
 0x6b7   :  { %2232 = vmatpush3.msra.mxu0 %v2751_v55  ;;  %2247 = vmatprep.mubr.msk.f32.mxu0 %vm2530_vm0, %v2529_v3 }
 0x6b8   :  { %2233 = vmatprep.subr.mxu0 %v2529_v3 }
 0x6b9   :  { %2234 = vmatpush3.msra.mxu0 %v2757_v57 }
 0x6ba   :  { %2235 = vmatprep.subr.mxu0 %v2529_v3 }
 0x6bb   :  { %2236 = vmatpush3.msra.mxu0 %v2766_v58 }
 0x6bc   :  { %2237 = vmatprep.subr.mxu0 %v2529_v3 }
 0x6bd   :  { %2238 = vmatpush3.msra.mxu0 %v2773_v59 }
 0x6be   :  { %2239 = vmatprep.subr.mxu0 %v2529_v3 }
 0x6bf   :  { %2240 = vmatpush3.msra.mxu0 %v2780_v60 }
 0x6c0   :  { %2241 = vmatprep.subr.mxu0 %v2529_v3 }
 0x6c1   :  { %2242 = vmatpush3.msra.mxu0 %v2787_v61  ;;  %v628_v39 = vpop.permute.xlu0 %627 }
 0x6c2   :  { %2243 = vmatprep.subr.mxu0 %v2529_v3  ;;  %v630_v40 = vsel %vm139_vm2, %v525_v38, %v628_v39 }
 0x6c3   :  { %2244 = vmatpush3.msra.mxu0 %v2794_v62 }
 0x6c4   :  { %2245 = vmatprep.subr.mxu0 %v2529_v3 }
 0x6c5   :  { %2246 = vmatpush3.msra.mxu0 %v2801_v63 }
 0x6c6   :  { %2248 = vmatmul.mubr.msk.f32.vlgmr.msra.gmra.mxu0 %vm226_vm3, %v630_v40  ;;  %2280 = vmatprep.subr.mxu0 %v2529_v3 }
 0x6c7   :  { %2281 = vmatpush3.msra.mxu0 %v2679_v27  ;;  %2288 = vmatprep.mubr.msk.f32.mxu0 %vm2530_vm0, %v2529_v3 }
 0x6c8   :  { %2282 = vmatprep.subr.mxu0 %v2529_v3 }
 0x6c9   :  { %2283 = vmatpush3.msra.mxu0 %v2686_v28 }
 0x6ca   :  { %2284 = vmatprep.subr.mxu0 %v2529_v3 }
 0x6cb   :  { %2285 = vmatpush3.msra.mxu0 %v2692_v29 }
 0x6cc   :  { %2286 = vmatprep.subr.mxu0 %v2529_v3 }
 0x6cd   :  { %2287 = vmatpush3.msra.mxu0 %v2699_v30 }
 0x6ce   :  { %2291 = vmatprep.subr.mxu0 %v2529_v3 }
 0x776   :  { %v594_v41 = vpop.f32.mrf.mxu0 }
 0x777   :  { %v599_v43 = vrot.slane %v594_v41, 6 }
 0x778   :  { %v2230_v45 = vpop.f32.mrf.mxu0 }
 0x779   :  { %v601_v46 = vadd.f32 %v599_v43, %v2729_v36 }
 0x77b   :  { %2450 = vtanh.f32 %v601_v46 }
 0x786   :  { %v700_v47 = vpop.f32.mrf.mxu0 }
 0x787   :  { %v701_v48 = vadd.f32 %v700_v47, %v2823_v6 }
 0x788   :  { %v2451_v49 = vpop.eup %2450  ;;  %v2249_v50 = vpop.f32.mrf.mxu0 }
 0x789   :  { %v604_v51 = vrot.slane %v2451_v49, 2  ;;  %2452 = vtanh.f32 %v701_v48 }
 0x78b   :  { %v606_v52 = vmul.f32 %v604_v51, %v2735_v42 }
 0x78d   :  { %v607_v53 = vadd.f32 %v606_v52, %v2737_v44 }
 0x78f   :  { %610 = vrot.lane.b32.xlu1 %v607_v53, %s2532_s4  ;;  %v608_v7 = vmul.f32 %v607_v53, %v2835_v23 }
 0x796   :  { %v2453_v54 = vpop.eup %2452 }
 0x797   :  { %v705_v56 = vmul.f32 %v2453_v54, %v2735_v42 }
 0x799   :  { %v706_v0 = vadd.f32 %v705_v56, %v2737_v44 }
 0x79b   :  { %709 = vrot.lane.b32.xlu0 %v706_v0, %s2532_s4  ;;  %v707_v10 = vmul.f32 %v706_v0, %v2838_v26 }
 0x801   :  { %v611_v1 = vpop.permute.xlu1 %610 }
 0x802   :  { %v613_v2 = vmul.f32 %v611_v1, %v607_v53 }
 0x804   :  { %615 = vrot.lane.b32.xlu1 %v613_v2, %s2533_s13 }
 0x80d   :  { %v710_v4 = vpop.permute.xlu0 %709 }
 0x80e   :  { %v712_v5 = vmul.f32 %v710_v4, %v706_v0 }
 0x810   :  { %714 = vrot.lane.b32.xlu0 %v712_v5, %s2533_s13 }
 0x876   :  { %v616_v8 = vpop.permute.xlu1 %615 }
 0x877   :  { %v2890_v9 = vadd.f32 %v616_v8, %v608_v7 }
 0x879   :  { %2454 = vtanh.f32 %v2890_v9 }
 0x882   :  { %v715_v11 = vpop.permute.xlu0 %714 }
 0x883   :  { %v2894_v12 = vadd.f32 %v715_v11, %v707_v10 }
 0x885   :  { %2456 = vtanh.f32 %v2894_v12 }
 0x886   :  { %v2455_v13 = vpop.eup %2454 }
 0x887   :  { %621 = vrot.lane.b32.xlu1 %v2455_v13, %s2532_s4 }
 0x892   :  { %v2457_v14 = vpop.eup %2456 }
 0x893   :  { %720 = vrot.lane.b32.xlu0 %v2457_v14, %s2532_s4 }
 0x8f9   :  { %v622_v15 = vpop.permute.xlu1 %621 }
 0x8fa   :  { %v624_v16 = vmul.f32 %v622_v15, %v607_v53 }
 0x8fc   :  { %725 = vrot.lane.b32.xlu1 %v624_v16, %s2533_s13 }
 0x905   :  { %v721_v17 = vpop.permute.xlu0 %720 }
 0x906   :  { %v2900_v18 = vmul.f32 %v721_v17, %v706_v0 }
 0x908   :  { %828 = vrot.lane.b32.xlu0 %v2900_v18, %s2532_s4  ;;  %v1831_v2 = vrot.slane %v2900_v18, 7 }
 0x90a   :  { %v1847_v8 = vsel %vm1846_vm5, %v2844_v37, %v1831_v2 }
 0x96e   :  { %v726_v19 = vpop.permute.xlu1 %725 }
 0x96f   :  { %2259 = vmatmul.mubr.msk.f32.vlgmr.msra.gmra.mxu1 %vm139_vm2, %v726_v19 }
 0x970   :  { %2262 = vmatpush3.msra.mxu1 %v2751_v55  ;;  %2277 = vmatprep.mubr.msk.f32.mxu1 %vm2530_vm0, %v2529_v3 }
 0x971   :  { %2263 = vmatprep.subr.mxu1 %v2529_v3 }
 0x972   :  { %2264 = vmatpush3.msra.mxu1 %v2757_v57 }
 0x973   :  { %2265 = vmatprep.subr.mxu1 %v2529_v3 }
 0x974   :  { %2266 = vmatpush3.msra.mxu1 %v2766_v58 }
 0x975   :  { %2267 = vmatprep.subr.mxu1 %v2529_v3 }
 0x976   :  { %2268 = vmatpush3.msra.mxu1 %v2773_v59 }
 0x977   :  { %2269 = vmatprep.subr.mxu1 %v2529_v3 }
 0x978   :  { %2270 = vmatpush3.msra.mxu1 %v2780_v60 }
 0x979   :  { %2271 = vmatprep.subr.mxu1 %v2529_v3 }
 0x97a   :  { %2272 = vmatpush3.msra.mxu1 %v2787_v61  ;;  %v829_v20 = vpop.permute.xlu0 %828 }
 0x97b   :  { %2273 = vmatprep.subr.mxu1 %v2529_v3  ;;  %v831_v21 = vsel %vm139_vm2, %v726_v19, %v829_v20 }
 0x97c   :  { %2274 = vmatpush3.msra.mxu1 %v2794_v62 }
 0x97d   :  { %2275 = vmatprep.subr.mxu1 %v2529_v3 }
 0x97e   :  { %2276 = vmatpush3.msra.mxu1 %v2801_v63 }
 0x97f   :  { %2278 = vmatmul.mubr.msk.f32.vlgmr.msra.gmra.mxu1 %vm226_vm3, %v831_v21  ;;  %2310 = vmatprep.subr.mxu1 %v2529_v3 }
 0x980   :  { %2311 = vmatpush3.msra.mxu1 %v2679_v27  ;;  %2318 = vmatprep.mubr.msk.f32.mxu1 %vm2530_vm0, %v2529_v3 }
 0x981   :  { %2312 = vmatprep.subr.mxu1 %v2529_v3 }
 0x982   :  { %2313 = vmatpush3.msra.mxu1 %v2686_v28 }
 0x983   :  { %2314 = vmatprep.subr.mxu1 %v2529_v3 }
 0x984   :  { %2315 = vmatpush3.msra.mxu1 %v2692_v29 }
 0x985   :  { %2316 = vmatprep.subr.mxu1 %v2529_v3 }
 0x986   :  { %2317 = vmatpush3.msra.mxu1 %v2699_v30 }
 0x987   :  { %2321 = vmatprep.subr.mxu1 %v2529_v3 }
 0xa2f   :  { %v795_v22 = vpop.f32.mrf.mxu1 }
 0xa30   :  { %v800_v23 = vrot.slane %v795_v22, 5 }
 0xa31   :  { %v2260_v24 = vpop.f32.mrf.mxu1 }
 0xa32   :  { %v802_v25 = vadd.f32 %v800_v23, %v2729_v36 }
 0xa34   :  { %2458 = vtanh.f32 %v802_v25 }
 0xa3f   :  { %v901_v26 = vpop.f32.mrf.mxu1 }
 0xa40   :  { %v902_v31 = vadd.f32 %v901_v26, %v2823_v6 }
 0xa41   :  { %v2459_v32 = vpop.eup %2458  ;;  %v2279_v33 = vpop.f32.mrf.mxu1 }
 0xa42   :  { %v805_v34 = vrot.slane %v2459_v32, 3  ;;  %2460 = vtanh.f32 %v902_v31 }
 0xa44   :  { %v807_v35 = vmul.f32 %v805_v34, %v2735_v42 }
 0xa46   :  { %v808_v38 = vadd.f32 %v807_v35, %v2737_v44 }
 0xa48   :  { %811 = vrot.lane.b32.xlu1 %v808_v38, %s2532_s4  ;;  %v809_v48 = vmul.f32 %v808_v38, %v2890_v9 }
 0xa4f   :  { %v2461_v39 = vpop.eup %2460 }
 0xa50   :  { %v906_v40 = vmul.f32 %v2461_v39, %v2735_v42 }
 0xa52   :  { %v907_v41 = vadd.f32 %v906_v40, %v2737_v44 }
 0xa54   :  { %910 = vrot.lane.b32.xlu0 %v907_v41, %s2532_s4  ;;  %v908_v51 = vmul.f32 %v907_v41, %v2894_v12 }
 0xaba   :  { %v812_v43 = vpop.permute.xlu1 %811 }
 0xabb   :  { %v814_v45 = vmul.f32 %v812_v43, %v808_v38 }
 0xabd   :  { %816 = vrot.lane.b32.xlu1 %v814_v45, %s2533_s13 }
 0xac6   :  { %v911_v46 = vpop.permute.xlu0 %910 }
 0xac7   :  { %v913_v47 = vmul.f32 %v911_v46, %v907_v41 }
 0xac9   :  { %915 = vrot.lane.b32.xlu0 %v913_v47, %s2533_s13 }
 0xb2f   :  { %v817_v49 = vpop.permute.xlu1 %816 }
 0xb30   :  { %v2946_v50 = vadd.f32 %v817_v49, %v809_v48 }
 0xb32   :  { %2462 = vtanh.f32 %v2946_v50 }
 0xb3b   :  { %v916_v52 = vpop.permute.xlu0 %915 }
 0xb3c   :  { %v2950_v53 = vadd.f32 %v916_v52, %v908_v51 }
 0xb3e   :  { %2464 = vtanh.f32 %v2950_v53 }
 0xb3f   :  { %v2463_v54 = vpop.eup %2462 }
 0xb40   :  { %822 = vrot.lane.b32.xlu1 %v2463_v54, %s2532_s4 }
 0xb4b   :  { %v2465_v56 = vpop.eup %2464 }
 0xb4c   :  { %921 = vrot.lane.b32.xlu0 %v2465_v56, %s2532_s4 }
 0xbb2   :  { %v823_v0 = vpop.permute.xlu1 %822 }
 0xbb3   :  { %v825_v1 = vmul.f32 %v823_v0, %v808_v38 }
 0xbb5   :  { %926 = vrot.lane.b32.xlu1 %v825_v1, %s2533_s13 }
 0xbbe   :  { %v922_v4 = vpop.permute.xlu0 %921 }
 0xbbf   :  { %v924_v5 = vmul.f32 %v922_v4, %v907_v41 }
 0xbc1   :  { %v1833_v7 = vrot.slane %v924_v5, 6  ;;  %1029 = vrot.lane.b32.xlu0 %v924_v5, %s2532_s4 }
 0xbc3   :  { %v2959_v9 = vsel %vm1848_vm6, %v1847_v8, %v1833_v7 }
 0xc27   :  { %v927_v10 = vpop.permute.xlu1 %926 }
 0xc28   :  { %2289 = vmatmul.mubr.msk.f32.vlgmr.msra.gmra.mxu0 %vm139_vm2, %v927_v10 }
 0xc29   :  { %2292 = vmatpush3.msra.mxu0 %v2751_v55  ;;  %2307 = vmatprep.mubr.msk.f32.mxu0 %vm2530_vm0, %v2529_v3 }
 0xc2a   :  { %2293 = vmatprep.subr.mxu0 %v2529_v3 }
 0xc2b   :  { %2294 = vmatpush3.msra.mxu0 %v2757_v57 }
 0xc2c   :  { %2295 = vmatprep.subr.mxu0 %v2529_v3 }
 0xc2d   :  { %2296 = vmatpush3.msra.mxu0 %v2766_v58 }
 0xc2e   :  { %2297 = vmatprep.subr.mxu0 %v2529_v3 }
 0xc2f   :  { %2298 = vmatpush3.msra.mxu0 %v2773_v59 }
 0xc30   :  { %2299 = vmatprep.subr.mxu0 %v2529_v3 }
 0xc31   :  { %2300 = vmatpush3.msra.mxu0 %v2780_v60 }
 0xc32   :  { %2301 = vmatprep.subr.mxu0 %v2529_v3 }
 0xc33   :  { %2302 = vmatpush3.msra.mxu0 %v2787_v61  ;;  %v1030_v37 = vpop.permute.xlu0 %1029 }
 0xc34   :  { %2303 = vmatprep.subr.mxu0 %v2529_v3  ;;  %v1032_v11 = vsel %vm139_vm2, %v927_v10, %v1030_v37 }
 0xc35   :  { %2304 = vmatpush3.msra.mxu0 %v2794_v62 }
 0xc36   :  { %2305 = vmatprep.subr.mxu0 %v2529_v3 }
 0xc37   :  { %2306 = vmatpush3.msra.mxu0 %v2801_v63 }
 0xc38   :  { %2308 = vmatmul.mubr.msk.f32.vlgmr.msra.gmra.mxu0 %vm226_vm3, %v1032_v11  ;;  %2340 = vmatprep.subr.mxu0 %v2529_v3 }
 0xc39   :  { %2341 = vmatpush3.msra.mxu0 %v2679_v27  ;;  %2348 = vmatprep.mubr.msk.f32.mxu0 %vm2530_vm0, %v2529_v3 }
 0xc3a   :  { %2342 = vmatprep.subr.mxu0 %v2529_v3 }
 0xc3b   :  { %2343 = vmatpush3.msra.mxu0 %v2686_v28 }
 0xc3c   :  { %2344 = vmatprep.subr.mxu0 %v2529_v3 }
 0xc3d   :  { %2345 = vmatpush3.msra.mxu0 %v2692_v29 }
 0xc3e   :  { %2346 = vmatprep.subr.mxu0 %v2529_v3 }
 0xc3f   :  { %2347 = vmatpush3.msra.mxu0 %v2699_v30 }
 0xc40   :  { %2351 = vmatprep.subr.mxu0 %v2529_v3 }
 0xce8   :  { %v996_v12 = vpop.f32.mrf.mxu0 }
 0xce9   :  { %v1001_v13 = vrot.slane %v996_v12, 4 }
 0xcea   :  { %v2290_v14 = vpop.f32.mrf.mxu0 }
 0xceb   :  { %v1003_v15 = vadd.f32 %v1001_v13, %v2729_v36 }
 0xced   :  { %2466 = vtanh.f32 %v1003_v15 }
 0xcf8   :  { %v1102_v16 = vpop.f32.mrf.mxu0 }
 0xcf9   :  { %v1103_v17 = vadd.f32 %v1102_v16, %v2823_v6 }
 0xcfa   :  { %v2467_v18 = vpop.eup %2466  ;;  %v2309_v19 = vpop.f32.mrf.mxu0 }
 0xcfb   :  { %v1006_v20 = vrot.slane %v2467_v18, 4  ;;  %2468 = vtanh.f32 %v1103_v17 }
 0xcfd   :  { %v1008_v21 = vmul.f32 %v1006_v20, %v2735_v42 }
 0xcff   :  { %v1009_v22 = vadd.f32 %v1008_v21, %v2737_v44 }
 0xd01   :  { %1012 = vrot.lane.b32.xlu1 %v1009_v22, %s2532_s4  ;;  %v1010_v34 = vmul.f32 %v1009_v22, %v2946_v50 }
 0xd08   :  { %v2469_v23 = vpop.eup %2468 }
 0xd09   :  { %v1107_v24 = vmul.f32 %v2469_v23, %v2735_v42 }
 0xd0b   :  { %v1108_v25 = vadd.f32 %v1107_v24, %v2737_v44 }
 0xd0d   :  { %1111 = vrot.lane.b32.xlu0 %v1108_v25, %s2532_s4  ;;  %v1109_v39 = vmul.f32 %v1108_v25, %v2950_v53 }
 0xd73   :  { %v1013_v26 = vpop.permute.xlu1 %1012 }
 0xd74   :  { %v1015_v31 = vmul.f32 %v1013_v26, %v1009_v22 }
 0xd76   :  { %1017 = vrot.lane.b32.xlu1 %v1015_v31, %s2533_s13 }
 0xd7f   :  { %v1112_v32 = vpop.permute.xlu0 %1111 }
 0xd80   :  { %v1114_v33 = vmul.f32 %v1112_v32, %v1108_v25 }
 0xd82   :  { %1116 = vrot.lane.b32.xlu0 %v1114_v33, %s2533_s13 }
 0xde8   :  { %v1018_v35 = vpop.permute.xlu1 %1017 }
 0xde9   :  { %v3003_v38 = vadd.f32 %v1018_v35, %v1010_v34 }
 0xdeb   :  { %2470 = vtanh.f32 %v3003_v38 }
 0xdf4   :  { %v1117_v40 = vpop.permute.xlu0 %1116 }
 0xdf5   :  { %v3007_v41 = vadd.f32 %v1117_v40, %v1109_v39 }
 0xdf7   :  { %2472 = vtanh.f32 %v3007_v41 }
 0xdf8   :  { %v2471_v43 = vpop.eup %2470 }
 0xdf9   :  { %1023 = vrot.lane.b32.xlu1 %v2471_v43, %s2532_s4 }
 0xe04   :  { %v2473_v45 = vpop.eup %2472 }
 0xe05   :  { %1122 = vrot.lane.b32.xlu0 %v2473_v45, %s2532_s4 }
 0xe6b   :  { %v1024_v46 = vpop.permute.xlu1 %1023 }
 0xe6c   :  { %v1026_v47 = vmul.f32 %v1024_v46, %v1009_v22 }
 0xe6e   :  { %1127 = vrot.lane.b32.xlu1 %v1026_v47, %s2533_s13 }
 0xe77   :  { %v1123_v48 = vpop.permute.xlu0 %1122 }
 0xe78   :  { %v1125_v49 = vmul.f32 %v1123_v48, %v1108_v25 }
 0xe7a   :  { %v1835_v50 = vrot.slane %v1125_v49, 5  ;;  %1230 = vrot.lane.b32.xlu0 %v1125_v49, %s2532_s4 }
 0xe7c   :  { %v3015_v51 = vsel %vm1850_vm7, %v2959_v9, %v1835_v50 }
 0xee0   :  { %v1128_v52 = vpop.permute.xlu1 %1127 }
 0xee1   :  { %2319 = vmatmul.mubr.msk.f32.vlgmr.msra.gmra.mxu1 %vm139_vm2, %v1128_v52 }
 0xee2   :  { %2322 = vmatpush3.msra.mxu1 %v2751_v55  ;;  %2337 = vmatprep.mubr.msk.f32.mxu1 %vm2530_vm0, %v2529_v3 }
 0xee3   :  { %2323 = vmatprep.subr.mxu1 %v2529_v3 }
 0xee4   :  { %2324 = vmatpush3.msra.mxu1 %v2757_v57 }
 0xee5   :  { %2325 = vmatprep.subr.mxu1 %v2529_v3 }
 0xee6   :  { %2326 = vmatpush3.msra.mxu1 %v2766_v58 }
 0xee7   :  { %2327 = vmatprep.subr.mxu1 %v2529_v3 }
 0xee8   :  { %2328 = vmatpush3.msra.mxu1 %v2773_v59 }
 0xee9   :  { %2329 = vmatprep.subr.mxu1 %v2529_v3 }
 0xeea   :  { %2330 = vmatpush3.msra.mxu1 %v2780_v60 }
 0xeeb   :  { %2331 = vmatprep.subr.mxu1 %v2529_v3 }
 0xeec   :  { %2332 = vmatpush3.msra.mxu1 %v2787_v61  ;;  %v1231_v53 = vpop.permute.xlu0 %1230 }
 0xeed   :  { %2333 = vmatprep.subr.mxu1 %v2529_v3  ;;  %v1233_v54 = vsel %vm139_vm2, %v1128_v52, %v1231_v53 }
 0xeee   :  { %2334 = vmatpush3.msra.mxu1 %v2794_v62 }
 0xeef   :  { %2335 = vmatprep.subr.mxu1 %v2529_v3 }
 0xef0   :  { %2336 = vmatpush3.msra.mxu1 %v2801_v63 }
 0xef1   :  { %2338 = vmatmul.mubr.msk.f32.vlgmr.msra.gmra.mxu1 %vm226_vm3, %v1233_v54  ;;  %2370 = vmatprep.subr.mxu1 %v2529_v3 }
 0xef2   :  { %2371 = vmatpush3.msra.mxu1 %v2679_v27  ;;  %2378 = vmatprep.mubr.msk.f32.mxu1 %vm2530_vm0, %v2529_v3 }
 0xef3   :  { %2372 = vmatprep.subr.mxu1 %v2529_v3 }
 0xef4   :  { %2373 = vmatpush3.msra.mxu1 %v2686_v28 }
 0xef5   :  { %2374 = vmatprep.subr.mxu1 %v2529_v3 }
 0xef6   :  { %2375 = vmatpush3.msra.mxu1 %v2692_v29 }
 0xef7   :  { %2376 = vmatprep.subr.mxu1 %v2529_v3 }
 0xef8   :  { %2377 = vmatpush3.msra.mxu1 %v2699_v30 }
 0xef9   :  { %2381 = vmatprep.subr.mxu1 %v2529_v3 }
 0xfa1   :  { %v1197_v56 = vpop.f32.mrf.mxu1 }
 0xfa2   :  { %v1202_v0 = vrot.slane %v1197_v56, 3 }
 0xfa3   :  { %v2320_v27 = vpop.f32.mrf.mxu1 }
 0xfa4   :  { %v1204_v1 = vadd.f32 %v1202_v0, %v2729_v36 }
 0xfa6   :  { %2474 = vtanh.f32 %v1204_v1 }
 0xfb1   :  { %v1303_v2 = vpop.f32.mrf.mxu1 }
 0xfb2   :  { %v1304_v4 = vadd.f32 %v1303_v2, %v2823_v6 }
 0xfb3   :  { %v2475_v28 = vpop.eup %2474  ;;  %v2339_v5 = vpop.f32.mrf.mxu1 }
 0xfb4   :  { %v1207_v7 = vrot.slane %v2475_v28, 5  ;;  %2476 = vtanh.f32 %v1304_v4 }
 0xfb6   :  { %v1209_v29 = vmul.f32 %v1207_v7, %v2735_v42 }
 0xfb8   :  { %v1210_v8 = vadd.f32 %v1209_v29, %v2737_v44 }
 0xfba   :  { %1213 = vrot.lane.b32.xlu1 %v1210_v8, %s2532_s4  ;;  %v1211_v14 = vmul.f32 %v1210_v8, %v3003_v38 }
 0xfc1   :  { %v2477_v30 = vpop.eup %2476 }
 0xfc2   :  { %v1308_v9 = vmul.f32 %v2477_v30, %v2735_v42 }
 0xfc4   :  { %v1309_v10 = vadd.f32 %v1308_v9, %v2737_v44 }
 0xfc6   :  { %1312 = vrot.lane.b32.xlu0 %v1309_v10, %s2532_s4  ;;  %v1310_v17 = vmul.f32 %v1309_v10, %v3007_v41 }
0x102c   :  { %v1214_v37 = vpop.permute.xlu1 %1213 }
0x102d   :  { %v1216_v11 = vmul.f32 %v1214_v37, %v1210_v8 }
0x102f   :  { %1218 = vrot.lane.b32.xlu1 %v1216_v11, %s2533_s13 }
0x1038   :  { %v1313_v12 = vpop.permute.xlu0 %1312 }
0x1039   :  { %v1315_v13 = vmul.f32 %v1313_v12, %v1309_v10 }
0x103b   :  { %1317 = vrot.lane.b32.xlu0 %v1315_v13, %s2533_s13 }
0x10a1   :  { %v1219_v15 = vpop.permute.xlu1 %1218 }
0x10a2   :  { %v3059_v16 = vadd.f32 %v1219_v15, %v1211_v14 }
0x10a4   :  { %2478 = vtanh.f32 %v3059_v16 }
0x10ad   :  { %v1318_v18 = vpop.permute.xlu0 %1317 }
0x10ae   :  { %v3063_v19 = vadd.f32 %v1318_v18, %v1310_v17 }
0x10b0   :  { %2480 = vtanh.f32 %v3063_v19 }
0x10b1   :  { %v2479_v20 = vpop.eup %2478 }
0x10b2   :  { %1224 = vrot.lane.b32.xlu1 %v2479_v20, %s2532_s4 }
0x10bd   :  { %v2481_v21 = vpop.eup %2480 }
0x10be   :  { %1323 = vrot.lane.b32.xlu0 %v2481_v21, %s2532_s4 }
0x1124   :  { %v1225_v22 = vpop.permute.xlu1 %1224 }
0x1125   :  { %v1227_v23 = vmul.f32 %v1225_v22, %v1210_v8 }
0x1127   :  { %1328 = vrot.lane.b32.xlu1 %v1227_v23, %s2533_s13 }
0x1130   :  { %v1324_v24 = vpop.permute.xlu0 %1323 }
0x1131   :  { %v1326_v25 = vmul.f32 %v1324_v24, %v1309_v10 }
0x1133   :  { %v1837_v26 = vrot.slane %v1326_v25, 4  ;;  %1431 = vrot.lane.b32.xlu0 %v1326_v25, %s2532_s4 }
0x1135   :  { %v3071_v31 = vsel %vm1852_vm8, %v3015_v51, %v1837_v26 }
0x1199   :  { %v1329_v32 = vpop.permute.xlu1 %1328 }
0x119a   :  { %2349 = vmatmul.mubr.msk.f32.vlgmr.msra.gmra.mxu0 %vm139_vm2, %v1329_v32 }
0x119b   :  { %2352 = vmatpush3.msra.mxu0 %v2751_v55  ;;  %2367 = vmatprep.mubr.msk.f32.mxu0 %vm2530_vm0, %v2529_v3 }
0x119c   :  { %2353 = vmatprep.subr.mxu0 %v2529_v3 }
0x119d   :  { %2354 = vmatpush3.msra.mxu0 %v2757_v57 }
0x119e   :  { %2355 = vmatprep.subr.mxu0 %v2529_v3 }
0x119f   :  { %2356 = vmatpush3.msra.mxu0 %v2766_v58 }
0x11a0   :  { %2357 = vmatprep.subr.mxu0 %v2529_v3 }
0x11a1   :  { %2358 = vmatpush3.msra.mxu0 %v2773_v59 }
0x11a2   :  { %2359 = vmatprep.subr.mxu0 %v2529_v3 }
0x11a3   :  { %2360 = vmatpush3.msra.mxu0 %v2780_v60 }
0x11a4   :  { %2361 = vmatprep.subr.mxu0 %v2529_v3 }
0x11a5   :  { %2362 = vmatpush3.msra.mxu0 %v2787_v61  ;;  %v1432_v33 = vpop.permute.xlu0 %1431 }
0x11a6   :  { %2363 = vmatprep.subr.mxu0 %v2529_v3  ;;  %v1434_v34 = vsel %vm139_vm2, %v1329_v32, %v1432_v33 }
0x11a7   :  { %2364 = vmatpush3.msra.mxu0 %v2794_v62 }
0x11a8   :  { %2365 = vmatprep.subr.mxu0 %v2529_v3 }
0x11a9   :  { %2366 = vmatpush3.msra.mxu0 %v2801_v63 }
0x11aa   :  { %2368 = vmatmul.mubr.msk.f32.vlgmr.msra.gmra.mxu0 %vm226_vm3, %v1434_v34  ;;  %2400 = vmatprep.subr.mxu0 %v2529_v3 }
0x11ab   :  { %2401 = vmatpush3.msra.mxu0 %v2751_v55  ;;  %2416 = vmatprep.mubr.msk.f32.mxu0 %vm2530_vm0, %v2529_v3 }
0x11ac   :  { %2402 = vmatprep.subr.mxu0 %v2529_v3 }
0x11ad   :  { %2403 = vmatpush3.msra.mxu0 %v2757_v57 }
0x11ae   :  { %2404 = vmatprep.subr.mxu0 %v2529_v3 }
0x11af   :  { %2405 = vmatpush3.msra.mxu0 %v2766_v58 }
0x11b0   :  { %2406 = vmatprep.subr.mxu0 %v2529_v3 }
0x11b1   :  { %2407 = vmatpush3.msra.mxu0 %v2773_v59 }
0x11b2   :  { %2408 = vmatprep.subr.mxu0 %v2529_v3 }
0x11b3   :  { %2409 = vmatpush3.msra.mxu0 %v2780_v60 }
0x11b4   :  { %2410 = vmatprep.subr.mxu0 %v2529_v3 }
0x11b5   :  { %2411 = vmatpush3.msra.mxu0 %v2787_v61 }
0x11b6   :  { %2412 = vmatprep.subr.mxu0 %v2529_v3 }
0x11b7   :  { %2413 = vmatpush3.msra.mxu0 %v2794_v62 }
0x11b8   :  { %2414 = vmatprep.subr.mxu0 %v2529_v3 }
0x11b9   :  { %2415 = vmatpush3.msra.mxu0 %v2801_v63 }
0x125a   :  { %v1398_v35 = vpop.f32.mrf.mxu0 }
0x125b   :  { %v1403_v38 = vrot.slane %v1398_v35, 2 }
0x125c   :  { %v2350_v39 = vpop.f32.mrf.mxu0 }
0x125d   :  { %v1405_v40 = vadd.f32 %v1403_v38, %v2729_v36 }
0x125f   :  { %2482 = vtanh.f32 %v1405_v40 }
0x126a   :  { %v1504_v41 = vpop.f32.mrf.mxu0 }
0x126b   :  { %v1505_v43 = vadd.f32 %v1504_v41, %v2823_v6 }
0x126c   :  { %v2483_v45 = vpop.eup %2482  ;;  %v2369_v46 = vpop.f32.mrf.mxu0 }
0x126d   :  { %v1408_v47 = vrot.slane %v2483_v45, 6  ;;  %2484 = vtanh.f32 %v1505_v43 }
0x126f   :  { %v1410_v48 = vmul.f32 %v1408_v47, %v2735_v42 }
0x1271   :  { %v1411_v49 = vadd.f32 %v1410_v48, %v2737_v44 }
0x1273   :  { %1414 = vrot.lane.b32.xlu1 %v1411_v49, %s2532_s4  ;;  %v1412_v27 = vmul.f32 %v1411_v49, %v3059_v16 }
0x127a   :  { %v2485_v50 = vpop.eup %2484 }
0x127b   :  { %v1509_v51 = vmul.f32 %v2485_v50, %v2735_v42 }
0x127d   :  { %v1510_v52 = vadd.f32 %v1509_v51, %v2737_v44 }
0x127f   :  { %1513 = vrot.lane.b32.xlu0 %v1510_v52, %s2532_s4  ;;  %v1511_v4 = vmul.f32 %v1510_v52, %v3063_v19 }
0x12e5   :  { %v1415_v53 = vpop.permute.xlu1 %1414 }
0x12e6   :  { %v1417_v54 = vmul.f32 %v1415_v53, %v1411_v49 }
0x12e8   :  { %1419 = vrot.lane.b32.xlu1 %v1417_v54, %s2533_s13 }
0x12f1   :  { %v1514_v56 = vpop.permute.xlu0 %1513 }
0x12f2   :  { %v1516_v0 = vmul.f32 %v1514_v56, %v1510_v52 }
0x12f4   :  { %1518 = vrot.lane.b32.xlu0 %v1516_v0, %s2533_s13 }
0x135a   :  { %v1420_v1 = vpop.permute.xlu1 %1419 }
0x135b   :  { %v3122_v2 = vadd.f32 %v1420_v1, %v1412_v27 }
0x135d   :  { %2486 = vtanh.f32 %v3122_v2 }
0x1366   :  { %v1519_v28 = vpop.permute.xlu0 %1518 }
0x1367   :  { %v3126_v5 = vadd.f32 %v1519_v28, %v1511_v4  ;;  %v1860_v4 = vld [vmem:[%s3214_s7] sm:$0xff] }
0x1369   :  { %2488 = vtanh.f32 %v3126_v5 }
0x136a   :  { %v2487_v7 = vpop.eup %2486 }
0x136b   :  { %1425 = vrot.lane.b32.xlu1 %v2487_v7, %s2532_s4 }
0x1376   :  { %v2489_v29 = vpop.eup %2488 }
0x1377   :  { %1524 = vrot.lane.b32.xlu0 %v2489_v29, %s2532_s4 }
0x13dd   :  { %v1426_v8 = vpop.permute.xlu1 %1425 }
0x13de   :  { %v1428_v30 = vmul.f32 %v1426_v8, %v1411_v49 }
0x13e0   :  { %1529 = vrot.lane.b32.xlu1 %v1428_v30, %s2533_s13 }
0x13e9   :  { %v1525_v9 = vpop.permute.xlu0 %1524 }
0x13ea   :  { %v1527_v10 = vmul.f32 %v1525_v9, %v1510_v52  ;;  %v1992_v9 = vld [vmem:[%s3215_s8] ss:$0 sm:$0xff] }
0x13ec   :  { %v1839_v37 = vrot.slane %v1527_v10, 3  ;;  %1632 = vrot.lane.b32.xlu0 %v1527_v10, %s2532_s4 }
0x13ee   :  { %v3134_v11 = vsel %vm1854_vm9, %v3071_v31, %v1839_v37 }
0x1452   :  { %v1530_v12 = vpop.permute.xlu1 %1529 }
0x1453   :  { %2379 = vmatmul.mubr.msk.f32.vlgmr.msra.gmra.mxu1 %vm139_vm2, %v1530_v12 }
0x1454   :  { %2382 = vmatpush3.msra.mxu1 %v2751_v55  ;;  %2397 = vmatprep.mubr.msk.f32.mxu1 %vm2530_vm0, %v2529_v3 }
0x1455   :  { %2383 = vmatprep.subr.mxu1 %v2529_v3 }
0x1456   :  { %2384 = vmatpush3.msra.mxu1 %v2757_v57 }
0x1457   :  { %2385 = vmatprep.subr.mxu1 %v2529_v3 }
0x1458   :  { %2386 = vmatpush3.msra.mxu1 %v2766_v58 }
0x1459   :  { %2387 = vmatprep.subr.mxu1 %v2529_v3 }
0x145a   :  { %2388 = vmatpush3.msra.mxu1 %v2773_v59 }
0x145b   :  { %2389 = vmatprep.subr.mxu1 %v2529_v3 }
0x145c   :  { %2390 = vmatpush3.msra.mxu1 %v2780_v60 }
0x145d   :  { %2391 = vmatprep.subr.mxu1 %v2529_v3 }
0x145e   :  { %2392 = vmatpush3.msra.mxu1 %v2787_v61  ;;  %v1633_v55 = vpop.permute.xlu0 %1632 }
0x145f   :  { %2393 = vmatprep.subr.mxu1 %v2529_v3  ;;  %v1635_v57 = vsel %vm139_vm2, %v1530_v12, %v1633_v55 }
0x1460   :  { %2394 = vmatpush3.msra.mxu1 %v2794_v62 }
0x1461   :  { %2395 = vmatprep.subr.mxu1 %v2529_v3 }
0x1462   :  { %2396 = vmatpush3.msra.mxu1 %v2801_v63 }
0x1463   :  { %2398 = vmatmul.mubr.msk.f32.vlgmr.msra.gmra.mxu1 %vm226_vm3, %v1635_v57  ;;  %2419 = vmatprep.subr.mxu1 %v2529_v3 }
0x1464   :  { %2427 = vmatprep.mubr.msk.f32.mxu1 %vm2530_vm0, %v2529_v3 }
0x1513   :  { %v1599_v58 = vpop.f32.mrf.mxu1 }
0x1514   :  { %v1604_v59 = vrot.slane %v1599_v58, 1 }
0x1515   :  { %v2380_v60 = vpop.f32.mrf.mxu1 }
0x1516   :  { %v1606_v61 = vadd.f32 %v1604_v59, %v2729_v36 }
0x1518   :  { %2490 = vtanh.f32 %v1606_v61 }
0x1523   :  { %v1705_v62 = vpop.f32.mrf.mxu1 }
0x1524   :  { %v1706_v13 = vadd.f32 %v1705_v62, %v2823_v6 }
0x1525   :  { %v2491_v14 = vpop.eup %2490  ;;  %v2399_v15 = vpop.f32.mrf.mxu1 }
0x1526   :  { %v1609_v16 = vrot.slane %v2491_v14, 7  ;;  %2492 = vtanh.f32 %v1706_v13 }
0x1528   :  { %v1611_v63 = vmul.f32 %v1609_v16, %v2735_v42 }
0x152a   :  { %v1612_v17 = vadd.f32 %v1611_v63, %v2737_v44 }
0x152c   :  { %1615 = vrot.lane.b32.xlu1 %v1612_v17, %s2532_s4  ;;  %v1613_v24 = vmul.f32 %v1612_v17, %v3122_v2 }
0x1533   :  { %v2493_v18 = vpop.eup %2492 }
0x1534   :  { %v1710_v19 = vmul.f32 %v2493_v18, %v2735_v42 }
0x1536   :  { %v1711_v20 = vadd.f32 %v1710_v19, %v2737_v44 }
0x1538   :  { %1714 = vrot.lane.b32.xlu0 %v1711_v20, %s2532_s4  ;;  %v1712_v31 = vmul.f32 %v1711_v20, %v3126_v5 }
0x159e   :  { %v1616_v36 = vpop.permute.xlu1 %1615 }
0x159f   :  { %v1618_v21 = vmul.f32 %v1616_v36, %v1612_v17 }
0x15a1   :  { %1620 = vrot.lane.b32.xlu1 %v1618_v21, %s2533_s13 }
0x15aa   :  { %v1715_v22 = vpop.permute.xlu0 %1714 }
0x15ab   :  { %v1717_v23 = vmul.f32 %v1715_v22, %v1711_v20 }
0x15ad   :  { %1719 = vrot.lane.b32.xlu0 %v1717_v23, %s2533_s13 }
0x1613   :  { %v1621_v25 = vpop.permute.xlu1 %1620 }
0x1614   :  { %v1623_v26 = vadd.f32 %v1621_v25, %v1613_v24 }
0x1616   :  { %2494 = vtanh.f32 %v1623_v26 }
0x161f   :  { %v1720_v32 = vpop.permute.xlu0 %1719 }
0x1620   :  { %v1722_v33 = vadd.f32 %v1720_v32, %v1712_v31 }
0x1622   :  { %2496 = vtanh.f32 %v1722_v33 }
0x1623   :  { %v2495_v34 = vpop.eup %2494 }
0x1624   :  { %1626 = vrot.lane.b32.xlu1 %v2495_v34, %s2532_s4 }
0x162f   :  { %v2497_v35 = vpop.eup %2496 }
0x1630   :  { %1725 = vrot.lane.b32.xlu0 %v2497_v35, %s2532_s4 }
0x1696   :  { %v1627_v38 = vpop.permute.xlu1 %1626 }
0x1697   :  { %v1629_v39 = vmul.f32 %v1627_v38, %v1612_v17 }
0x1699   :  { %1730 = vrot.lane.b32.xlu1 %v1629_v39, %s2533_s13 }
0x16a2   :  { %v1726_v40 = vpop.permute.xlu0 %1725 }
0x16a3   :  { %v1728_v41 = vmul.f32 %v1726_v40, %v1711_v20 }
0x16a5   :  { %v1841_v43 = vrot.slane %v1728_v41, 2  ;;  %1734 = vrot.lane.b32.xlu0 %v1728_v41, %s2532_s4 }
0x16a7   :  { %v1857_v45 = vsel %vm1856_vm10, %v3134_v11, %v1841_v43 }
0x170b   :  { %v1731_v46 = vpop.permute.xlu1 %1730 }
0x1717   :  { %v1735_v47 = vpop.permute.xlu0 %1734 }
0x1718   :  { %v1737_v48 = vsel %vm139_vm2, %v1731_v46, %v1735_v47 }
0x1719   :  { %2417 = vmatmul.mubr.msk.f32.vlgmr.msra.gmra.mxu0 %vm226_vm3, %v1737_v48 }
0x17d9   :  { %v1807_v49 = vpop.f32.mrf.mxu0 }
0x17da   :  { %v1808_v50 = vadd.f32 %v1807_v49, %v2823_v6  ;;  %v1863_v6 = vld [vmem:[%s3214_s7 + $0x18] sm:$0xff] }
0x17db   :  { %v2418_v51 = vpop.f32.mrf.mxu0  ;;  %2420 = vmatpush3.msra.mxu1 %v1863_v6 }
0x17dc   :  { %2498 = vtanh.f32 %v1808_v50  ;;  %2421 = vmatprep.subr.mxu1 %v2529_v3 }
0x17e9   :  { %v2499_v52 = vpop.eup %2498 }
0x17ea   :  { %v1812_v53 = vmul.f32 %v2499_v52, %v2735_v42  ;;  %v1862_v42 = vld [vmem:[%s3214_s7 + $0x10] sm:$0xff] }
0x17eb   :  { %2422 = vmatpush3.msra.mxu1 %v1862_v42 }
0x17ec   :  { %v1813_v54 = vadd.f32 %v1812_v53, %v2737_v44  ;;  %v1861_v44 = vld [vmem:[%s3214_s7 + $0x8] sm:$0xff]  ;;  %2423 = vmatprep.subr.mxu1 %v2529_v3  ;;  %s2534_s7 = smov [#allocation2]  }
0x17ed   :  { %2424 = vmatpush3.msra.mxu1 %v1861_v44 }
0x17ee   :  { %1816 = vrot.lane.b32.xlu1 %v1813_v54, %s2532_s4  ;;  %v1814_v27 = vmul.f32 %v1813_v54, %v1722_v33  ;;  %2425 = vmatprep.subr.mxu1 %v2529_v3 }
0x17ef   :  { %2426 = vmatpush3.msra.mxu1 %v1860_v4 }
0x1860   :  { %v1817_v56 = vpop.permute.xlu1 %1816 }
0x1861   :  { %v1819_v0 = vmul.f32 %v1817_v56, %v1813_v54 }
0x1863   :  { %1821 = vrot.lane.b32.xlu0 %v1819_v0, %s2533_s13 }
0x18d5   :  { %v1822_v1 = vpop.permute.xlu0 %1821 }
0x18d6   :  { %v1824_v2 = vadd.f32 %v1822_v1, %v1814_v27 }
0x18d8   :  { %2500 = vtanh.f32 %v1824_v2 }
0x18e5   :  { %v2501_v28 = vpop.eup %2500 }
0x18e6   :  { %1827 = vrot.lane.b32.xlu1 %v2501_v28, %s2532_s4  ;;  %s1965_s4 = sshll.u32 %s2534_s7, 4  ;;  %s1966_s4 = int_to_ptr.vmem [resolvable:$true] %s1965_s4 }
0x18e7   :  { %s2506_s8 = scalar_lea.vmem %s1966_s4, 128  ;;  %p2511_p1 = scmp.lt.s32.totalorder %s1966_s4, %s1966_s4 }
0x18e8   :  { %p2507_p0 = scmp.ne.s32.totalorder %s1966_s4, %s2506_s8  ;;  %p2512_p2 = scmp.lt.s32.totalorder %s2506_s8, %s2506_s8 }
0x18ea   :  { %p2513_p3 = por %p2512_p2, %p2511_p1 }
0x18ec   :  { %p2514_p4 = pnand %p2513_p3, %p2507_p0 }
0x1958   :  { %v1828_v5 = vpop.permute.xlu1 %1827 }
0x1959   :  { %v1830_v7 = vmul.f32 %v1828_v5, %v1813_v54 }
0x195b   :  { %v1844_v29 = vrot.slane %v1830_v7, 1 }
0x195d   :  { %v1859_v8 = vsel %vm1858_vm11, %v1857_v45, %v1844_v29 }
0x195e   :  { %1872 = vrot.lane.b32.xlu0 %v1859_v8, %s2533_s13 }
0x19d0   :  { %v1873_v30 = vpop.permute.xlu0 %1872 }
0x19d1   :  { %2428 = vmatmul.mubr.msk.f32.vlgmr.msra.gmra.mxu1 %vm139_vm2, %v1873_v30 }
0x1a91   :  { %v1942_v10 = vpop.f32.mrf.mxu1 }
0x1a92   :  { %v1943_v3 = vadd.f32 %v1992_v9, %v1942_v10 }
0x1a93   :  { %v2429_v37 = vpop.f32.mrf.mxu1 }
0x1a94   :  { %v1946_v11 = vmax.f32 %v1943_v3, 0.0 }
0x1a96   :  { %1947 = vmax.xlane.f32.xlu1 %v1946_v11 }
0x1b1f   :  { %v1948_v12 = vpop.xlane.xlu1 %1947 }
0x1b20   :  { %v1949_v55 = vsub.f32 %v1946_v11, %v1948_v12 }
0x1b22   :  { %v1950_v57 = vmul.f32 1.442695, %v1949_v55 }
0x1b24   :  { %2502 = vpow2.f32 %v1950_v57 }
0x1b31   :  { %v2503_v58 = vpop.eup %2502 }
0x1b32   :  { %1952 = vadd.xlane.f32.xlu0 %v2503_v58 }
0x1bbb   :  { %v1953_v59 = vpop.xlane.xlu0 %1952 }
0x1bbc   :  { %2504 = vlog2.f32 %v1953_v59 }
0x1bc9   :  { %v2505_v60 = vpop.eup %2504 }
0x1bca   :  { %v1955_v61 = vmul.f32 0.6931472, %v2505_v60 }
0x1bcc   :  { %v1956_v62 = vadd.f32 %v1955_v61, %v1948_v12 }
0x1bce   :  { %v1957_v13 = vsub.f32 %v1946_v11, %v1956_v62 }
0x1bd0   :  { %1958 = vst [vmem:[#allocation2] sm:$0xff] %v1957_v13 }
0x1bd1   :  { %2517 = shalt.err (!%p2514_p4)
}
0x1bd2   :  { %1968 = dma.vmem_to_hbm [thread:$0]  %s1966_s4, 128, %s3216_s9, [#allocation3]  }
0x1bd3   :  { %2526 = dma.done.wait [#allocation3], 128  }
0x1bd4   :  { %2527 = vsyncadd [#allocation3], 4294967168 }
0x1bd5   :  { %1972 = vsyncpa [#allocation3], 1 }

</bundles_post_ra>
